<compile_context>
chip_gen: v7x
topology: tpu7x:2x2x1
jax: 0.10.0
libtpu: 0.0.40
codegen_flags: <defaults>
</compile_context>

<pallas_src>
import math

import jax
import jax.numpy as jnp
from jax.experimental import pallas as pl
from jax.experimental.pallas import tpu as pltpu

LN_EPS = 1e-5  # PyTorch nn.LayerNorm default


def _layernorm(v, g, b):
    mu = jnp.mean(v, axis=-1, keepdims=True)
    var = jnp.mean((v - mu) ** 2, axis=-1, keepdims=True)
    return (v - mu) * jax.lax.rsqrt(var + LN_EPS) * g + b


def forecaster_decoder_kernel(
    inp_ref,    # (B*S, D)  flattened input sequence (batch-major)
    pe_ref,     # (S, D)    positional encoding table (NOT tiled over batch)
    last_ref,   # (B, D)    input[:, -1, :]
    qraw_ref,   # (B, D)    raw query duplicated along features
    bias_ref,   # (11, D)   [1/q, b_sa, g1, be1, bq_c*scale, bo_c, g2, be2, b2f, g3, be3]
    wdd_ref,    # (4, D, D) [w_sa (=wv_s@wo_s), wq_c*scale, wo_c, head_block]
    wkv_ref,    # (D, 2D)   [wk_c | wv_c] fused
    bkv_ref,    # (1, 2D)   [bk_c | bv_c] fused
    w1_ref,     # (D, FF)
    b1_ref,     # (1, FF)
    w2_ref,     # (FF, D)
    out_ref,    # (B, D)
):
    BS, D = inp_ref.shape
    B = last_ref.shape[0]
    S = BS // B

    # Single vreg-level load of the bias slab, then cheap static slices.
    bias = bias_ref[...]                                     # (11, D)
    qdiv_inv = bias[0:1]
    b_sa = bias[1:2]
    g1, be1 = bias[2:3], bias[3:4]
    bq_c = bias[4:5]
    bo_c = bias[5:6]
    g2, be2 = bias[6:7], bias[7:8]
    b2f, g3, be3 = bias[8:9], bias[9:10], bias[10:11]

    w_sa = wdd_ref[0]          # folded self-attention matrix (wv_s @ wo_s)
    wq_c = wdd_ref[1]          # carries the 1/sqrt(head_dim) scale
    wo_c = wdd_ref[2]
    hblock = wdd_ref[3]        # (D, D) block-diagonal ones: 1 iff features share a head

    # ---- memory = PositionalEncoding(input); dropout -> identity in eval ----
    # PE is (S, D); broadcast over the batch inside the kernel (VPU add, no extra DMA).
    mem = (inp_ref[...].reshape(B, S, D) + pe_ref[...][None, :, :]).reshape(BS, D)

    # ---- query featurization: sin/cos(query / self.q) then add last input step ----
    lane = jax.lax.broadcasted_iota(jnp.int32, (B, D), 1)
    qn = qraw_ref[...] * qdiv_inv                            # (B, D)
    qcat = jnp.where(lane < D // 2, jnp.sin(qn), jnp.cos(qn))
    tgt = qcat + last_ref[...]                               # (B, D)

    # ---- self-attention block, folded: softmax over the single key is exactly 1,
    # so the block reduces to tgt @ (wv_s @ wo_s) + (bv_s @ wo_s + bo_s). ----
    sa = jnp.dot(tgt, w_sa, preferred_element_type=jnp.float32) + b_sa
    x2 = _layernorm(tgt + sa, g1, be1)                       # (B, D)

    # ---- cross-attention over memory ----
    qc = jnp.dot(x2, wq_c, preferred_element_type=jnp.float32) + bq_c        # (B, D)
    # Fused K/V projection: one full-lane-width (BS, 2D) matmul, then static slices.
    kv = jnp.dot(mem, wkv_ref[...], preferred_element_type=jnp.float32) + bkv_ref[...]
    kc = kv[:, :D]                                                            # (B*S, D)
    vc = kv[:, D:]                                                            # (B*S, D)

    # Per-head scores, replicated across every lane of the head, via one block-ones
    # matmul.  (Assumes contiguous head chunks, as in PyTorch MultiheadAttention.)
    prod3 = kc.reshape(B, S, D) * qc[:, None, :]                              # (B, S, D)
    scores = jnp.dot(prod3.reshape(BS, D), hblock,
                     preferred_element_type=jnp.float32)                      # (B*S, D)

    scores3 = scores.reshape(B, S, D)
    m = jnp.max(scores3, axis=1, keepdims=True)
    e = jnp.exp(scores3 - m)
    p = e / jnp.sum(e, axis=1, keepdims=True)                # softmax over keys, per head
    att = jnp.sum(p * vc.reshape(B, S, D), axis=1)           # (B, D)

    ca = jnp.dot(att, wo_c, preferred_element_type=jnp.float32) + bo_c
    x3 = _layernorm(x2 + ca, g2, be2)

    # ---- feed-forward, exact erf GELU (PyTorch activation='gelu', approximate='none') ----
    h = jnp.dot(x3, w1_ref[...], preferred_element_type=jnp.float32) + b1_ref[...]
    h = 0.5 * h * (1.0 + jax.lax.erf(h * jnp.float32(1.0 / math.sqrt(2.0))))
    f = jnp.dot(h, w2_ref[...], preferred_element_type=jnp.float32) + b2f
    x4 = _layernorm(x3 + f, g3, be3)

    out_ref[...] = x4                                        # single (B, D) store


def init_params(key, latent_size, nhead=32, max_len=64):
    """Raw (PyTorch-layout-equivalent) parameters; used by the pure-JAX reference."""
    D = latent_size
    ff = 4 * D
    ks = jax.random.split(key, 32)
    ki = iter(ks)

    def lin_w(fan_in, fan_out):
        bound = 1.0 / math.sqrt(fan_in)
        return jax.random.uniform(next(ki), (fan_in, fan_out), jnp.float32, -bound, bound)

    def lin_b(fan_in, n):
        bound = 1.0 / math.sqrt(fan_in)
        return jax.random.uniform(next(ki), (1, n), jnp.float32, -bound, bound)

    params = {
        "nhead": nhead,
        # self-attention (only V + out projections matter: target length is 1)
        "wv_s": lin_w(D, D), "bv_s": lin_b(D, D),
        "wo_s": lin_w(D, D), "bo_s": lin_b(D, D),
        "g1": jnp.ones((1, D), jnp.float32), "be1": jnp.zeros((1, D), jnp.float32),
        # cross-attention
        "wq_c": lin_w(D, D), "bq_c": lin_b(D, D),
        "wk_c": lin_w(D, D), "bk_c": lin_b(D, D),
        "wv_c": lin_w(D, D), "bv_c": lin_b(D, D),
        "wo_c": lin_w(D, D), "bo_c": lin_b(D, D),
        "g2": jnp.ones((1, D), jnp.float32), "be2": jnp.zeros((1, D), jnp.float32),
        # feed-forward
        "w1": lin_w(D, ff), "b1f": lin_b(D, ff),
        "w2": lin_w(ff, D), "b2f": lin_b(ff, D),
        "g3": jnp.ones((1, D), jnp.float32), "be3": jnp.zeros((1, D), jnp.float32),
    }

    # PositionalEncoding buffer: pe[k, 0::2] = sin(k * div), pe[k, 1::2] = cos(k * div)
    pos = jnp.arange(max_len, dtype=jnp.float32)[:, None]
    div_term = jnp.exp(jnp.arange(0, D, 2, dtype=jnp.float32) * (-math.log(10000.0) / D))
    pe = jnp.zeros((max_len, D), jnp.float32)
    pe = pe.at[:, 0::2].set(jnp.sin(pos * div_term))
    pe = pe.at[:, 1::2].set(jnp.cos(pos * div_term))
    params["pe"] = pe

    # self.q = 10000 ** (arange(0, D, 2) / D)
    params["qvec"] = 10000.0 ** (jnp.arange(0, D, 2, dtype=jnp.float32) / D)
    return params


def prepare_params(params):
    """One-time, input-independent packing of kernel operands (hoisted out of the
    per-call path: folded self-attn matrix, scale folds, fused K/V, bias slab,
    head-block matrix, 1/q reciprocal)."""
    p = params
    D = p["wq_c"].shape[0]
    H = p["nhead"]
    hd = D // H
    scale = 1.0 / math.sqrt(hd)

    # Folded degenerate self-attention (single-key softmax == 1).
    w_sa = p["wv_s"] @ p["wo_s"]                                   # (D, D)
    b_sa = p["bv_s"] @ p["wo_s"] + p["bo_s"]                       # (1, D)

    qdiv_inv = (1.0 / jnp.concatenate([p["qvec"], p["qvec"]])).reshape(1, D)

    bias_pack = jnp.concatenate([
        qdiv_inv, b_sa, p["g1"], p["be1"],
        p["bq_c"] * scale, p["bo_c"], p["g2"], p["be2"],
        p["b2f"], p["g3"], p["be3"],
    ], axis=0)                                                     # (11, D)

    # Head-block matrix: 1 iff two features belong to the same contiguous head chunk.
    head_id = jnp.arange(D) // hd
    hblock = (head_id[:, None] == head_id[None, :]).astype(jnp.float32)  # (D, D)

    wdd = jnp.stack([w_sa, p["wq_c"] * scale, p["wo_c"], hblock], axis=0)  # (4, D, D)

    # Fused cross-attention K/V projection -> one full-lane-width matmul in-kernel.
    wkv = jnp.concatenate([p["wk_c"], p["wv_c"]], axis=1)          # (D, 2D)
    bkv = jnp.concatenate([p["bk_c"], p["bv_c"]], axis=1)          # (1, 2D)

    return {
        "nhead": H,
        "pe": p["pe"],
        "bias_pack": bias_pack,
        "wdd": wdd,
        "wkv": wkv,
        "bkv": bkv,
        "w1": p["w1"], "b1f": p["b1f"], "w2": p["w2"],
    }


def forecaster_forward(prep, inp, query):
    """Forecaster.forward: transformer decoder on (input, query) -> latent prediction."""
    B, S, D = inp.shape
    FF = prep["w1"].shape[1]

    # Per-call host-side work is only input-dependent plumbing.
    inp_flat = inp.reshape(B * S, D)
    last = inp[:, -1, :]                                           # (B, D)
    qraw2 = jnp.concatenate([query, query], axis=-1)               # (B, D)
    pe = prep["pe"][:S]                                            # (S, D)

    operands = [inp_flat, pe, last, qraw2,
                prep["bias_pack"], prep["wdd"], prep["wkv"], prep["bkv"],
                prep["w1"], prep["b1f"], prep["w2"]]

    in_specs = [
        pl.BlockSpec((B * S, D), lambda i: (0, 0)),
        pl.BlockSpec((S, D), lambda i: (0, 0)),
        pl.BlockSpec((B, D), lambda i: (0, 0)),
        pl.BlockSpec((B, D), lambda i: (0, 0)),
        pl.BlockSpec((11, D), lambda i: (0, 0)),
        pl.BlockSpec((4, D, D), lambda i: (0, 0, 0)),
        pl.BlockSpec((D, 2 * D), lambda i: (0, 0)),
        pl.BlockSpec((1, 2 * D), lambda i: (0, 0)),
        pl.BlockSpec((D, FF), lambda i: (0, 0)),
        pl.BlockSpec((1, FF), lambda i: (0, 0)),
        pl.BlockSpec((FF, D), lambda i: (0, 0)),
    ]

    out = pl.pallas_call(
        forecaster_decoder_kernel,
        out_shape=jax.ShapeDtypeStruct((B, D), jnp.float32),
        grid_spec=pltpu.PrefetchScalarGridSpec(
            num_scalar_prefetch=0,
            grid=(1,),                     # batch folded into the block (see header note)
            in_specs=in_specs,
            out_specs=pl.BlockSpec((B, D), lambda i: (0, 0)),
        ),
        compiler_params=pltpu.CompilerParams(dimension_semantics=("arbitrary",)),
    )(*operands)

    predict_latent = out
    # TODO(synk): `Autoencoder` is not defined in the reference source, so
    # `self.autoencoder.decoder(predict_latent)` has no specification; the latent
    # prediction is returned unchanged instead of being faked.
    return predict_latent


def reference_forward(params, inp, query):
    """Pure-JAX reference (true per-head reshape, unfolded self-attn) for validation."""
    B, S, D = inp.shape
    H = params["nhead"]
    hd = D // H
    p = params
    mem = inp + p["pe"][:S][None]
    qn = query / p["qvec"][None, :]
    qcat = jnp.concatenate([jnp.sin(qn), jnp.cos(qn)], axis=-1)
    tgt = qcat + inp[:, -1]

    v_s = tgt @ p["wv_s"] + p["bv_s"]
    sa = v_s @ p["wo_s"] + p["bo_s"]
    x2 = _layernorm(tgt + sa, p["g1"], p["be1"])

    scale = 1.0 / math.sqrt(hd)
    qc = (x2 @ p["wq_c"] + p["bq_c"]) * scale
    kc = mem @ p["wk_c"] + p["bk_c"]
    vc = mem @ p["wv_c"] + p["bv_c"]
    qh = qc.reshape(B, H, hd)
    kh = kc.reshape(B, S, H, hd)
    vh = vc.reshape(B, S, H, hd)
    scores = jnp.einsum("bhd,bshd->bhs", qh, kh)
    pw = jax.nn.softmax(scores, axis=-1)
    att = jnp.einsum("bhs,bshd->bhd", pw, vh).reshape(B, D)
    ca = att @ p["wo_c"] + p["bo_c"]
    x3 = _layernorm(x2 + ca, p["g2"], p["be2"])

    h = x3 @ p["w1"] + p["b1f"]
    h = 0.5 * h * (1.0 + jax.lax.erf(h / jnp.sqrt(jnp.float32(2.0))))
    f = h @ p["w2"] + p["b2f"]
    x4 = _layernorm(x3 + f, p["g3"], p["be3"])
    return x4


if __name__ == "__main__":
    B, S, D, H = 2, 8, 64, 32          # latent_size=64 so nhead=32 divides it (head_dim=2)
    key = jax.random.PRNGKey(0)
    kp, kx, kq = jax.random.split(key, 3)

    params = init_params(kp, D, H)
    prep = prepare_params(params)      # one-time constant packing (hoisted off hot path)

    inp = jax.random.normal(kx, (B, S, D), jnp.float32)              # (batch, seq, latent)
    query = jax.random.uniform(kq, (B, D // 2), jnp.float32) * 10.0  # raw scalar query feats

    out = forecaster_forward(prep, inp, query)
    out = jax.block_until_ready(out)

    ref = reference_forward(params, inp, query)
    err = float(jnp.max(jnp.abs(out - ref)))
    assert out.shape == (B, D), out.shape
    assert err < 1e-3, f"max abs error vs reference: {err}"
    print("KERNEL_OK")
</pallas_src>

<mosaic_0001>
module attributes {stable_mosaic.version = 11 : i64} {
  func.func @forecaster_decoder_kernel(%arg0: i32, %arg1: memref<16x64xf32, #tpu.memory_space<vmem>>, %arg2: memref<8x64xf32, #tpu.memory_space<vmem>>, %arg3: memref<2x64xf32, #tpu.memory_space<vmem>>, %arg4: memref<2x64xf32, #tpu.memory_space<vmem>>, %arg5: memref<11x64xf32, #tpu.memory_space<vmem>>, %arg6: memref<4x64x64xf32, #tpu.memory_space<vmem>>, %arg7: memref<64x128xf32, #tpu.memory_space<vmem>>, %arg8: memref<1x128xf32, #tpu.memory_space<vmem>>, %arg9: memref<64x256xf32, #tpu.memory_space<vmem>>, %arg10: memref<1x256xf32, #tpu.memory_space<vmem>>, %arg11: memref<256x64xf32, #tpu.memory_space<vmem>>, %arg12: memref<2x64xf32, #tpu.memory_space<vmem>>) attributes {dimension_semantics = [#tpu.dimension_semantics<arbitrary>], iteration_bounds = array<i64: 1>, scalar_prefetch = 0 : i64, scratch_operands = 0 : i64, tpu.core_type = #tpu.core_type<tc>, window_params = [{pipeline_mode = #tpu.pipeline_mode<synchronous>, transform_indices = @transform_0, window_bounds = array<i64: 16, 64>}, {pipeline_mode = #tpu.pipeline_mode<synchronous>, transform_indices = @transform_1, window_bounds = array<i64: 8, 64>}, {pipeline_mode = #tpu.pipeline_mode<synchronous>, transform_indices = @transform_2, window_bounds = array<i64: 2, 64>}, {pipeline_mode = #tpu.pipeline_mode<synchronous>, transform_indices = @transform_3, window_bounds = array<i64: 2, 64>}, {pipeline_mode = #tpu.pipeline_mode<synchronous>, transform_indices = @transform_4, window_bounds = array<i64: 11, 64>}, {pipeline_mode = #tpu.pipeline_mode<synchronous>, transform_indices = @transform_5, window_bounds = array<i64: 4, 64, 64>}, {pipeline_mode = #tpu.pipeline_mode<synchronous>, transform_indices = @transform_6, window_bounds = array<i64: 64, 128>}, {pipeline_mode = #tpu.pipeline_mode<synchronous>, transform_indices = @transform_7, window_bounds = array<i64: 1, 128>}, {pipeline_mode = #tpu.pipeline_mode<synchronous>, transform_indices = @transform_8, window_bounds = array<i64: 64, 256>}, {pipeline_mode = #tpu.pipeline_mode<synchronous>, transform_indices = @transform_9, window_bounds = array<i64: 1, 256>}, {pipeline_mode = #tpu.pipeline_mode<synchronous>, transform_indices = @transform_10, window_bounds = array<i64: 256, 64>}, {pipeline_mode = #tpu.pipeline_mode<synchronous>, transform_indices = @transform_11, window_bounds = array<i64: 2, 64>}]} {
    %c0 = arith.constant 0 : index
    %c0_0 = arith.constant 0 : index
    %0 = vector.load %arg5[%c0, %c0_0] : memref<11x64xf32, #tpu.memory_space<vmem>>, vector<11x64xf32>
    %1 = vector.extract_strided_slice %0 {offsets = [0, 0], sizes = [1, 64], strides = [1, 1]} : vector<11x64xf32> to vector<1x64xf32>
    %2 = vector.extract_strided_slice %0 {offsets = [1, 0], sizes = [1, 64], strides = [1, 1]} : vector<11x64xf32> to vector<1x64xf32>
    %3 = vector.extract_strided_slice %0 {offsets = [2, 0], sizes = [1, 64], strides = [1, 1]} : vector<11x64xf32> to vector<1x64xf32>
    %4 = vector.extract_strided_slice %0 {offsets = [3, 0], sizes = [1, 64], strides = [1, 1]} : vector<11x64xf32> to vector<1x64xf32>
    %5 = vector.extract_strided_slice %0 {offsets = [4, 0], sizes = [1, 64], strides = [1, 1]} : vector<11x64xf32> to vector<1x64xf32>
    %6 = vector.extract_strided_slice %0 {offsets = [5, 0], sizes = [1, 64], strides = [1, 1]} : vector<11x64xf32> to vector<1x64xf32>
    %7 = vector.extract_strided_slice %0 {offsets = [6, 0], sizes = [1, 64], strides = [1, 1]} : vector<11x64xf32> to vector<1x64xf32>
    %8 = vector.extract_strided_slice %0 {offsets = [7, 0], sizes = [1, 64], strides = [1, 1]} : vector<11x64xf32> to vector<1x64xf32>
    %9 = vector.extract_strided_slice %0 {offsets = [8, 0], sizes = [1, 64], strides = [1, 1]} : vector<11x64xf32> to vector<1x64xf32>
    %10 = vector.extract_strided_slice %0 {offsets = [9, 0], sizes = [1, 64], strides = [1, 1]} : vector<11x64xf32> to vector<1x64xf32>
    %11 = vector.extract_strided_slice %0 {offsets = [10, 0], sizes = [1, 64], strides = [1, 1]} : vector<11x64xf32> to vector<1x64xf32>
    %c0_1 = arith.constant 0 : index
    %c0_2 = arith.constant 0 : index
    %c0_3 = arith.constant 0 : index
    %12 = vector.load %arg6[%c0_1, %c0_2, %c0_3] : memref<4x64x64xf32, #tpu.memory_space<vmem>>, vector<1x64x64xf32>
    %13 = vector.shape_cast %12 : vector<1x64x64xf32> to vector<64x64xf32>
    %c1 = arith.constant 1 : index
    %c0_4 = arith.constant 0 : index
    %c0_5 = arith.constant 0 : index
    %14 = vector.load %arg6[%c1, %c0_4, %c0_5] : memref<4x64x64xf32, #tpu.memory_space<vmem>>, vector<1x64x64xf32>
    %15 = vector.shape_cast %14 : vector<1x64x64xf32> to vector<64x64xf32>
    %c2 = arith.constant 2 : index
    %c0_6 = arith.constant 0 : index
    %c0_7 = arith.constant 0 : index
    %16 = vector.load %arg6[%c2, %c0_6, %c0_7] : memref<4x64x64xf32, #tpu.memory_space<vmem>>, vector<1x64x64xf32>
    %17 = vector.shape_cast %16 : vector<1x64x64xf32> to vector<64x64xf32>
    %c3 = arith.constant 3 : index
    %c0_8 = arith.constant 0 : index
    %c0_9 = arith.constant 0 : index
    %18 = vector.load %arg6[%c3, %c0_8, %c0_9] : memref<4x64x64xf32, #tpu.memory_space<vmem>>, vector<1x64x64xf32>
    %19 = vector.shape_cast %18 : vector<1x64x64xf32> to vector<64x64xf32>
    %c0_10 = arith.constant 0 : index
    %c0_11 = arith.constant 0 : index
    %20 = vector.load %arg1[%c0_10, %c0_11] : memref<16x64xf32, #tpu.memory_space<vmem>>, vector<16x64xf32>
    %21 = vector.shape_cast %20 : vector<16x64xf32> to vector<2x8x64xf32>
    %c0_12 = arith.constant 0 : index
    %c0_13 = arith.constant 0 : index
    %22 = vector.load %arg2[%c0_12, %c0_13] : memref<8x64xf32, #tpu.memory_space<vmem>>, vector<8x64xf32>
    %23 = vector.shape_cast %22 : vector<8x64xf32> to vector<1x8x64xf32>
    %24 = vector.broadcast %23 : vector<1x8x64xf32> to vector<2x8x64xf32>
    %25 = arith.addf %21, %24 : vector<2x8x64xf32>
    %26 = vector.shape_cast %25 : vector<2x8x64xf32> to vector<16x64xf32>
    %27 = tpu.iota {dimensions = array<i32: 1>} : vector<2x64xi32>
    %c0_14 = arith.constant 0 : index
    %c0_15 = arith.constant 0 : index
    %28 = vector.load %arg4[%c0_14, %c0_15] : memref<2x64xf32, #tpu.memory_space<vmem>>, vector<2x64xf32>
    %29 = vector.broadcast %1 : vector<1x64xf32> to vector<2x64xf32>
    %30 = arith.mulf %28, %29 : vector<2x64xf32>
    %c32_i32 = arith.constant 32 : i32
    %31 = vector.broadcast %c32_i32 : i32 to vector<2x64xi32>
    %32 = arith.cmpi slt, %27, %31 : vector<2x64xi32>
    %33 = math.sin %30 : vector<2x64xf32>
    %34 = math.cos %30 : vector<2x64xf32>
    %35 = arith.select %32, %33, %34 : vector<2x64xi1>, vector<2x64xf32>
    %c0_16 = arith.constant 0 : index
    %c0_17 = arith.constant 0 : index
    %36 = vector.load %arg3[%c0_16, %c0_17] : memref<2x64xf32, #tpu.memory_space<vmem>>, vector<2x64xf32>
    %37 = arith.addf %35, %36 : vector<2x64xf32>
    %cst = arith.constant dense<0.000000e+00> : vector<2x64xf32>
    %38 = tpu.matmul %37, %13, %cst {dimension_numbers = #tpu.dot_dimension_numbers<[1], [0], [0], [1], [0, 0, 1, 1], [], []>} : vector<2x64xf32>, vector<64x64xf32>, vector<2x64xf32> -> vector<2x64xf32>
    %39 = vector.broadcast %2 : vector<1x64xf32> to vector<2x64xf32>
    %40 = arith.addf %38, %39 : vector<2x64xf32>
    %41 = arith.addf %37, %40 : vector<2x64xf32>
    %cst_18 = arith.constant dense<0.000000e+00> : vector<2xf32>
    %42 = vector.multi_reduction <add>, %41, %cst_18 [1] : vector<2x64xf32> to vector<2xf32>
    %43 = vector.shape_cast %42 : vector<2xf32> to vector<2x1xf32>
    %cst_19 = arith.constant 6.400000e+01 : f32
    %44 = vector.broadcast %cst_19 : f32 to vector<2x1xf32>
    %45 = arith.divf %43, %44 : vector<2x1xf32>
    %46 = vector.broadcast %45 : vector<2x1xf32> to vector<2x64xf32>
    %47 = arith.subf %41, %46 : vector<2x64xf32>
    %48 = arith.mulf %47, %47 : vector<2x64xf32>
    %cst_20 = arith.constant dense<0.000000e+00> : vector<2xf32>
    %49 = vector.multi_reduction <add>, %48, %cst_20 [1] : vector<2x64xf32> to vector<2xf32>
    %50 = vector.shape_cast %49 : vector<2xf32> to vector<2x1xf32>
    %cst_21 = arith.constant 6.400000e+01 : f32
    %51 = vector.broadcast %cst_21 : f32 to vector<2x1xf32>
    %52 = arith.divf %50, %51 : vector<2x1xf32>
    %53 = vector.broadcast %45 : vector<2x1xf32> to vector<2x64xf32>
    %54 = arith.subf %41, %53 : vector<2x64xf32>
    %cst_22 = arith.constant 9.99999974E-6 : f32
    %55 = vector.broadcast %cst_22 : f32 to vector<2x1xf32>
    %56 = arith.addf %52, %55 : vector<2x1xf32>
    %57 = math.rsqrt %56 : vector<2x1xf32>
    %58 = vector.broadcast %57 : vector<2x1xf32> to vector<2x64xf32>
    %59 = arith.mulf %54, %58 : vector<2x64xf32>
    %60 = vector.broadcast %3 : vector<1x64xf32> to vector<2x64xf32>
    %61 = arith.mulf %59, %60 : vector<2x64xf32>
    %62 = vector.broadcast %4 : vector<1x64xf32> to vector<2x64xf32>
    %63 = arith.addf %61, %62 : vector<2x64xf32>
    %cst_23 = arith.constant dense<0.000000e+00> : vector<2x64xf32>
    %64 = tpu.matmul %63, %15, %cst_23 {dimension_numbers = #tpu.dot_dimension_numbers<[1], [0], [0], [1], [0, 0, 1, 1], [], []>} : vector<2x64xf32>, vector<64x64xf32>, vector<2x64xf32> -> vector<2x64xf32>
    %65 = vector.broadcast %5 : vector<1x64xf32> to vector<2x64xf32>
    %66 = arith.addf %64, %65 : vector<2x64xf32>
    %c0_24 = arith.constant 0 : index
    %c0_25 = arith.constant 0 : index
    %67 = vector.load %arg7[%c0_24, %c0_25] : memref<64x128xf32, #tpu.memory_space<vmem>>, vector<64x128xf32>
    %cst_26 = arith.constant dense<0.000000e+00> : vector<16x128xf32>
    %68 = tpu.matmul %26, %67, %cst_26 {dimension_numbers = #tpu.dot_dimension_numbers<[1], [0], [0], [1], [0, 0, 1, 1], [], []>} : vector<16x64xf32>, vector<64x128xf32>, vector<16x128xf32> -> vector<16x128xf32>
    %c0_27 = arith.constant 0 : index
    %c0_28 = arith.constant 0 : index
    %69 = vector.load %arg8[%c0_27, %c0_28] : memref<1x128xf32, #tpu.memory_space<vmem>>, vector<1x128xf32>
    %70 = vector.broadcast %69 : vector<1x128xf32> to vector<16x128xf32>
    %71 = arith.addf %68, %70 : vector<16x128xf32>
    %72 = vector.extract_strided_slice %71 {offsets = [0, 0], sizes = [16, 64], strides = [1, 1]} : vector<16x128xf32> to vector<16x64xf32>
    %73 = vector.extract_strided_slice %71 {offsets = [0, 64], sizes = [16, 64], strides = [1, 1]} : vector<16x128xf32> to vector<16x64xf32>
    %74 = vector.shape_cast %72 : vector<16x64xf32> to vector<2x8x64xf32>
    %75 = vector.shape_cast %66 : vector<2x64xf32> to vector<2x1x64xf32>
    %76 = vector.broadcast %75 : vector<2x1x64xf32> to vector<2x8x64xf32>
    %77 = arith.mulf %74, %76 : vector<2x8x64xf32>
    %78 = vector.shape_cast %77 : vector<2x8x64xf32> to vector<16x64xf32>
    %cst_29 = arith.constant dense<0.000000e+00> : vector<16x64xf32>
    %79 = tpu.matmul %78, %19, %cst_29 {dimension_numbers = #tpu.dot_dimension_numbers<[1], [0], [0], [1], [0, 0, 1, 1], [], []>} : vector<16x64xf32>, vector<64x64xf32>, vector<16x64xf32> -> vector<16x64xf32>
    %80 = vector.shape_cast %79 : vector<16x64xf32> to vector<2x8x64xf32>
    %cst_30 = arith.constant dense<0xFF800000> : vector<2x64xf32>
    %81 = vector.multi_reduction <maximumf>, %80, %cst_30 [1] : vector<2x8x64xf32> to vector<2x64xf32>
    %82 = vector.shape_cast %81 : vector<2x64xf32> to vector<2x1x64xf32>
    %83 = vector.broadcast %82 : vector<2x1x64xf32> to vector<2x8x64xf32>
    %84 = arith.subf %80, %83 : vector<2x8x64xf32>
    %85 = math.exp %84 : vector<2x8x64xf32>
    %cst_31 = arith.constant dense<0.000000e+00> : vector<2x64xf32>
    %86 = vector.multi_reduction <add>, %85, %cst_31 [1] : vector<2x8x64xf32> to vector<2x64xf32>
    %87 = vector.shape_cast %86 : vector<2x64xf32> to vector<2x1x64xf32>
    %88 = vector.broadcast %87 : vector<2x1x64xf32> to vector<2x8x64xf32>
    %89 = arith.divf %85, %88 : vector<2x8x64xf32>
    %90 = vector.shape_cast %73 : vector<16x64xf32> to vector<2x8x64xf32>
    %91 = arith.mulf %89, %90 : vector<2x8x64xf32>
    %cst_32 = arith.constant dense<0.000000e+00> : vector<2x64xf32>
    %92 = vector.multi_reduction <add>, %91, %cst_32 [1] : vector<2x8x64xf32> to vector<2x64xf32>
    %cst_33 = arith.constant dense<0.000000e+00> : vector<2x64xf32>
    %93 = tpu.matmul %92, %17, %cst_33 {dimension_numbers = #tpu.dot_dimension_numbers<[1], [0], [0], [1], [0, 0, 1, 1], [], []>} : vector<2x64xf32>, vector<64x64xf32>, vector<2x64xf32> -> vector<2x64xf32>
    %94 = vector.broadcast %6 : vector<1x64xf32> to vector<2x64xf32>
    %95 = arith.addf %93, %94 : vector<2x64xf32>
    %96 = arith.addf %63, %95 : vector<2x64xf32>
    %cst_34 = arith.constant dense<0.000000e+00> : vector<2xf32>
    %97 = vector.multi_reduction <add>, %96, %cst_34 [1] : vector<2x64xf32> to vector<2xf32>
    %98 = vector.shape_cast %97 : vector<2xf32> to vector<2x1xf32>
    %cst_35 = arith.constant 6.400000e+01 : f32
    %99 = vector.broadcast %cst_35 : f32 to vector<2x1xf32>
    %100 = arith.divf %98, %99 : vector<2x1xf32>
    %101 = vector.broadcast %100 : vector<2x1xf32> to vector<2x64xf32>
    %102 = arith.subf %96, %101 : vector<2x64xf32>
    %103 = arith.mulf %102, %102 : vector<2x64xf32>
    %cst_36 = arith.constant dense<0.000000e+00> : vector<2xf32>
    %104 = vector.multi_reduction <add>, %103, %cst_36 [1] : vector<2x64xf32> to vector<2xf32>
    %105 = vector.shape_cast %104 : vector<2xf32> to vector<2x1xf32>
    %cst_37 = arith.constant 6.400000e+01 : f32
    %106 = vector.broadcast %cst_37 : f32 to vector<2x1xf32>
    %107 = arith.divf %105, %106 : vector<2x1xf32>
    %108 = vector.broadcast %100 : vector<2x1xf32> to vector<2x64xf32>
    %109 = arith.subf %96, %108 : vector<2x64xf32>
    %cst_38 = arith.constant 9.99999974E-6 : f32
    %110 = vector.broadcast %cst_38 : f32 to vector<2x1xf32>
    %111 = arith.addf %107, %110 : vector<2x1xf32>
    %112 = math.rsqrt %111 : vector<2x1xf32>
    %113 = vector.broadcast %112 : vector<2x1xf32> to vector<2x64xf32>
    %114 = arith.mulf %109, %113 : vector<2x64xf32>
    %115 = vector.broadcast %7 : vector<1x64xf32> to vector<2x64xf32>
    %116 = arith.mulf %114, %115 : vector<2x64xf32>
    %117 = vector.broadcast %8 : vector<1x64xf32> to vector<2x64xf32>
    %118 = arith.addf %116, %117 : vector<2x64xf32>
    %c0_39 = arith.constant 0 : index
    %c0_40 = arith.constant 0 : index
    %119 = vector.load %arg9[%c0_39, %c0_40] : memref<64x256xf32, #tpu.memory_space<vmem>>, vector<64x256xf32>
    %cst_41 = arith.constant dense<0.000000e+00> : vector<2x256xf32>
    %120 = tpu.matmul %118, %119, %cst_41 {dimension_numbers = #tpu.dot_dimension_numbers<[1], [0], [0], [1], [0, 0, 1, 1], [], []>} : vector<2x64xf32>, vector<64x256xf32>, vector<2x256xf32> -> vector<2x256xf32>
    %c0_42 = arith.constant 0 : index
    %c0_43 = arith.constant 0 : index
    %121 = vector.load %arg10[%c0_42, %c0_43] : memref<1x256xf32, #tpu.memory_space<vmem>>, vector<1x256xf32>
    %122 = vector.broadcast %121 : vector<1x256xf32> to vector<2x256xf32>
    %123 = arith.addf %120, %122 : vector<2x256xf32>
    %cst_44 = arith.constant 5.000000e-01 : f32
    %124 = vector.broadcast %cst_44 : f32 to vector<2x256xf32>
    %125 = arith.mulf %124, %123 : vector<2x256xf32>
    %cst_45 = arith.constant 0.707106769 : f32
    %126 = vector.broadcast %cst_45 : f32 to vector<2x256xf32>
    %127 = arith.mulf %123, %126 : vector<2x256xf32>
    %128 = math.erf %127 : vector<2x256xf32>
    %cst_46 = arith.constant 1.000000e+00 : f32
    %129 = vector.broadcast %cst_46 : f32 to vector<2x256xf32>
    %130 = arith.addf %129, %128 : vector<2x256xf32>
    %131 = arith.mulf %125, %130 : vector<2x256xf32>
    %c0_47 = arith.constant 0 : index
    %c0_48 = arith.constant 0 : index
    %132 = vector.load %arg11[%c0_47, %c0_48] : memref<256x64xf32, #tpu.memory_space<vmem>>, vector<256x64xf32>
    %cst_49 = arith.constant dense<0.000000e+00> : vector<2x64xf32>
    %133 = tpu.matmul %131, %132, %cst_49 {dimension_numbers = #tpu.dot_dimension_numbers<[1], [0], [0], [1], [0, 0, 1, 1], [], []>} : vector<2x256xf32>, vector<256x64xf32>, vector<2x64xf32> -> vector<2x64xf32>
    %134 = vector.broadcast %9 : vector<1x64xf32> to vector<2x64xf32>
    %135 = arith.addf %133, %134 : vector<2x64xf32>
    %136 = arith.addf %118, %135 : vector<2x64xf32>
    %cst_50 = arith.constant dense<0.000000e+00> : vector<2xf32>
    %137 = vector.multi_reduction <add>, %136, %cst_50 [1] : vector<2x64xf32> to vector<2xf32>
    %138 = vector.shape_cast %137 : vector<2xf32> to vector<2x1xf32>
    %cst_51 = arith.constant 6.400000e+01 : f32
    %139 = vector.broadcast %cst_51 : f32 to vector<2x1xf32>
    %140 = arith.divf %138, %139 : vector<2x1xf32>
    %141 = vector.broadcast %140 : vector<2x1xf32> to vector<2x64xf32>
    %142 = arith.subf %136, %141 : vector<2x64xf32>
    %143 = arith.mulf %142, %142 : vector<2x64xf32>
    %cst_52 = arith.constant dense<0.000000e+00> : vector<2xf32>
    %144 = vector.multi_reduction <add>, %143, %cst_52 [1] : vector<2x64xf32> to vector<2xf32>
    %145 = vector.shape_cast %144 : vector<2xf32> to vector<2x1xf32>
    %cst_53 = arith.constant 6.400000e+01 : f32
    %146 = vector.broadcast %cst_53 : f32 to vector<2x1xf32>
    %147 = arith.divf %145, %146 : vector<2x1xf32>
    %148 = vector.broadcast %140 : vector<2x1xf32> to vector<2x64xf32>
    %149 = arith.subf %136, %148 : vector<2x64xf32>
    %cst_54 = arith.constant 9.99999974E-6 : f32
    %150 = vector.broadcast %cst_54 : f32 to vector<2x1xf32>
    %151 = arith.addf %147, %150 : vector<2x1xf32>
    %152 = math.rsqrt %151 : vector<2x1xf32>
    %153 = vector.broadcast %152 : vector<2x1xf32> to vector<2x64xf32>
    %154 = arith.mulf %149, %153 : vector<2x64xf32>
    %155 = vector.broadcast %10 : vector<1x64xf32> to vector<2x64xf32>
    %156 = arith.mulf %154, %155 : vector<2x64xf32>
    %157 = vector.broadcast %11 : vector<1x64xf32> to vector<2x64xf32>
    %158 = arith.addf %156, %157 : vector<2x64xf32>
    %c0_55 = arith.constant 0 : index
    %c0_56 = arith.constant 0 : index
    %159 = vector.load %arg12[%c0_55, %c0_56] : memref<2x64xf32, #tpu.memory_space<vmem>>, vector<2x64xf32>
    tpu.vector_store %arg12[%c0_55, %c0_56], %158 {strides = array<i32>} : memref<2x64xf32, #tpu.memory_space<vmem>>, vector<2x64xf32>,
    return
  }
  func.func @transform_0(%arg0: i32) -> (i32, i32) {
    %c0_i32 = arith.constant 0 : i32
    %c0_i32_0 = arith.constant 0 : i32
    %c0_i32_1 = arith.constant 0 : i32
    return %c0_i32, %c0_i32_0 : i32, i32
  }
  func.func @transform_1(%arg0: i32) -> (i32, i32) {
    %c0_i32 = arith.constant 0 : i32
    %c0_i32_0 = arith.constant 0 : i32
    %c0_i32_1 = arith.constant 0 : i32
    return %c0_i32, %c0_i32_0 : i32, i32
  }
  func.func @transform_2(%arg0: i32) -> (i32, i32) {
    %c0_i32 = arith.constant 0 : i32
    %c0_i32_0 = arith.constant 0 : i32
    %c0_i32_1 = arith.constant 0 : i32
    return %c0_i32, %c0_i32_0 : i32, i32
  }
  func.func @transform_3(%arg0: i32) -> (i32, i32) {
    %c0_i32 = arith.constant 0 : i32
    %c0_i32_0 = arith.constant 0 : i32
    %c0_i32_1 = arith.constant 0 : i32
    return %c0_i32, %c0_i32_0 : i32, i32
  }
  func.func @transform_4(%arg0: i32) -> (i32, i32) {
    %c0_i32 = arith.constant 0 : i32
    %c0_i32_0 = arith.constant 0 : i32
    %c0_i32_1 = arith.constant 0 : i32
    return %c0_i32, %c0_i32_0 : i32, i32
  }
  func.func @transform_5(%arg0: i32) -> (i32, i32, i32) {
    %c0_i32 = arith.constant 0 : i32
    %c0_i32_0 = arith.constant 0 : i32
    %c0_i32_1 = arith.constant 0 : i32
    %c0_i32_2 = arith.constant 0 : i32
    return %c0_i32, %c0_i32_0, %c0_i32_1 : i32, i32, i32
  }
  func.func @transform_6(%arg0: i32) -> (i32, i32) {
    %c0_i32 = arith.constant 0 : i32
    %c0_i32_0 = arith.constant 0 : i32
    %c0_i32_1 = arith.constant 0 : i32
    return %c0_i32, %c0_i32_0 : i32, i32
  }
  func.func @transform_7(%arg0: i32) -> (i32, i32) {
    %c0_i32 = arith.constant 0 : i32
    %c0_i32_0 = arith.constant 0 : i32
    %c0_i32_1 = arith.constant 0 : i32
    return %c0_i32, %c0_i32_0 : i32, i32
  }
  func.func @transform_8(%arg0: i32) -> (i32, i32) {
    %c0_i32 = arith.constant 0 : i32
    %c0_i32_0 = arith.constant 0 : i32
    %c0_i32_1 = arith.constant 0 : i32
    return %c0_i32, %c0_i32_0 : i32, i32
  }
  func.func @transform_9(%arg0: i32) -> (i32, i32) {
    %c0_i32 = arith.constant 0 : i32
    %c0_i32_0 = arith.constant 0 : i32
    %c0_i32_1 = arith.constant 0 : i32
    return %c0_i32, %c0_i32_0 : i32, i32
  }
  func.func @transform_10(%arg0: i32) -> (i32, i32) {
    %c0_i32 = arith.constant 0 : i32
    %c0_i32_0 = arith.constant 0 : i32
    %c0_i32_1 = arith.constant 0 : i32
    return %c0_i32, %c0_i32_0 : i32, i32
  }
  func.func @transform_11(%arg0: i32) -> (i32, i32) {
    %c0_i32 = arith.constant 0 : i32
    %c0_i32_0 = arith.constant 0 : i32
    %c0_i32_1 = arith.constant 0 : i32
    return %c0_i32, %c0_i32_0 : i32, i32
  }
}

</mosaic_0001>

<bundles_post_ra>
// kernel: tpu_custom_call.1
= control target key start
LH: loop header
LB: loop body
LE: loop exit
PB: predicated region body
PF: predicated region fallthrough
CT: control target
= control target key end

     0   :  { %16 = vsyncpa [#allocation3], 0  ;;  %s2177_s0 = inlined_call_operand.vmem [shape: f32[16,64], index: 0, kind: input, shape index: {}]   ;;  %s2178_s1 = inlined_call_operand.hbm [shape: f32[8,64], index: 1, kind: input, shape index: {}]   ;;  %s2179_s2 = inlined_call_operand.vmem [shape: f32[2,64], index: 2, kind: input, shape index: {}]   ;;  %s2180_s3 = inlined_call_operand.hbm [shape: f32[2,64], index: 3, kind: input, shape index: {}]   ;;  %s2181_s4 = inlined_call_operand.hbm [shape: f32[11,64], index: 4, kind: input, shape index: {}]   ;;  %s2182_s5 = inlined_call_operand.vmem [shape: f32[4,64,64], index: 5, kind: input, shape index: {}]   ;;  %s2183_s6 = inlined_call_operand.hbm [shape: f32[64,128], index: 6, kind: input, shape index: {}]   ;;  %s2184_s7 = inlined_call_operand.vmem [shape: f32[1,128], index: 7, kind: input, shape index: {}]   ;;  %s2185_s8 = inlined_call_operand.vmem [shape: f32[64,256], index: 8, kind: input, shape index: {}]   ;;  %s2186_s9 = inlined_call_operand.vmem [shape: f32[1,256], index: 9, kind: input, shape index: {}]   ;;  %s2187_s10 = inlined_call_operand.vmem [shape: f32[256,64], index: 10, kind: input, shape index: {}]   ;;  %s2188_s11 = inlined_call_operand.hbm [shape: f32[2,64], index: 11, kind: output, shape index: {}]  }
   0x1   :  { %17 = vsyncpa [#allocation6], 0 }
   0x2   :  { %18 = vsyncpa [#allocation9], 0 }
   0x3   :  { %19 = vsyncpa [#allocation4], 0  ;;  %s1666_s17 = smov [#allocation5]   ;;  %s1667_s19 = smov [#allocation2]  }
   0x4   :  { %s40_s18 = sshll.u32 %s1666_s17, 4  ;;  %s28_s20 = sshll.u32 %s1667_s19, 4  ;;  %s41_s18 = int_to_ptr.vmem [resolvable:$true] %s40_s18  ;;  %s29_s20 = int_to_ptr.vmem [resolvable:$true] %s28_s20 }
   0x5   :  { %s1548_s23 = scalar_lea.hbm %s2180_s3, 32 }
   0x6   :  { %p1549_p0 = scmp.ne.s32.totalorder %s2180_s3, %s1548_s23  ;;  %p1552_p1 = scmp.lt.u32.totalorder %s1548_s23, %s2180_s3 }
   0x8   :  { %p1554_p2 = pnand %p1552_p1, %p1549_p0 }
   0xa   :  { %1557 = shalt.err (!%p1554_p2)
}
   0xb   :  { %s1558_s28 = scalar_lea.vmem %s41_s18, 32  ;;  %p1563_p4 = scmp.lt.s32.totalorder %s41_s18, %s41_s18 }
   0xc   :  { %p1559_p3 = scmp.ne.s32.totalorder %s41_s18, %s1558_s28  ;;  %p1564_p5 = scmp.lt.s32.totalorder %s1558_s28, %s1558_s28 }
   0xe   :  { %p1565_p6 = por %p1564_p5, %p1563_p4 }
  0x10   :  { %p1566_p7 = pnand %p1565_p6, %p1559_p3 }
  0x12   :  { %1569 = shalt.err (!%p1566_p7)
}
  0x13   :  { %43 = dma.hbm_to_vmem [thread:$0]  %s2180_s3, 32, %s41_s18, [#allocation6]  }
  0x14   :  { %s1570_s14 = scalar_lea.hbm %s2178_s1, 128 }
  0x15   :  { %p1571_p8 = scmp.ne.s32.totalorder %s2178_s1, %s1570_s14  ;;  %p1574_p9 = scmp.lt.u32.totalorder %s1570_s14, %s2178_s1 }
  0x17   :  { %p1576_p10 = pnand %p1574_p9, %p1571_p8 }
  0x19   :  { %1579 = shalt.err (!%p1576_p10)
}
  0x1a   :  { %s1580_s21 = scalar_lea.vmem %s29_s20, 128  ;;  %p1585_p12 = scmp.lt.s32.totalorder %s29_s20, %s29_s20 }
  0x1b   :  { %p1581_p11 = scmp.ne.s32.totalorder %s29_s20, %s1580_s21  ;;  %p1586_p13 = scmp.lt.s32.totalorder %s1580_s21, %s1580_s21 }
  0x1d   :  { %p1587_p0 = por %p1586_p13, %p1585_p12 }
  0x1f   :  { %p1588_p1 = pnand %p1587_p0, %p1581_p11 }
  0x21   :  { %1591 = shalt.err (!%p1588_p1)
}
  0x22   :  { %31 = dma.hbm_to_vmem [thread:$0]  %s2178_s1, 128, %s29_s20, [#allocation3]  }
  0x23   :  { %s1668_s22 = smov [#allocation7]   ;;  %s1592_s26 = scalar_lea.hbm %s2181_s4, 256 }
  0x24   :  { %s49_s23 = sshll.u32 %s1668_s22, 4  ;;  %p1593_p2 = scmp.ne.s32.totalorder %s2181_s4, %s1592_s26  ;;  %s50_s23 = int_to_ptr.vmem [resolvable:$true] %s49_s23 }
  0x25   :  { %p1596_p3 = scmp.lt.u32.totalorder %s1592_s26, %s2181_s4 }
  0x27   :  { %p1598_p4 = pnand %p1596_p3, %p1593_p2 }
  0x29   :  { %1601 = shalt.err (!%p1598_p4)
}
  0x2a   :  { %s1602_s12 = scalar_lea.vmem %s50_s23, 256  ;;  %p1607_p6 = scmp.lt.s32.totalorder %s50_s23, %s50_s23 }
  0x2b   :  { %p1603_p5 = scmp.ne.s32.totalorder %s50_s23, %s1602_s12  ;;  %p1608_p7 = scmp.lt.s32.totalorder %s1602_s12, %s1602_s12 }
  0x2d   :  { %p1609_p8 = por %p1608_p7, %p1607_p6 }
  0x2f   :  { %p1610_p9 = pnand %p1609_p8, %p1603_p5 }
  0x31   :  { %1613 = shalt.err (!%p1610_p9)
}
  0x32   :  { %s1669_s1 = smov 128   ;;  %s1670_s20 = smov 8  }
  0x33   :  { %55 = dma.hbm_to_vmem [thread:$0]  %s2181_s4, 256, %s50_s23, [#allocation6], %s1669_s1, %s1669_s1, %s1670_s20  }
  0x34   :  { %s1671_s15 = smov [#allocation8]   ;;  %s1614_s21 = scalar_lea.hbm %s2183_s6, 1024 }
  0x35   :  { %s63_s16 = sshll.u32 %s1671_s15, 4  ;;  %p1615_p10 = scmp.ne.s32.totalorder %s2183_s6, %s1614_s21  ;;  %s64_s16 = int_to_ptr.vmem [resolvable:$true] %s63_s16 }
  0x36   :  { %p1618_p11 = scmp.lt.u32.totalorder %s1614_s21, %s2183_s6 }
  0x38   :  { %p1620_p12 = pnand %p1618_p11, %p1615_p10 }
  0x3a   :  { %1623 = shalt.err (!%p1620_p12)
}
  0x3b   :  { %s1624_s25 = scalar_lea.vmem %s64_s16, 1024  ;;  %p1629_p0 = scmp.lt.s32.totalorder %s64_s16, %s64_s16 }
  0x3c   :  { %p1625_p13 = scmp.ne.s32.totalorder %s64_s16, %s1624_s25  ;;  %p1630_p1 = scmp.lt.s32.totalorder %s1624_s25, %s1624_s25 }
  0x3e   :  { %p1631_p2 = por %p1630_p1, %p1629_p0 }
  0x40   :  { %p1632_p3 = pnand %p1631_p2, %p1625_p13 }
  0x42   :  { %1635 = shalt.err (!%p1632_p3)
}
  0x43   :  { %69 = dma.hbm_to_vmem [thread:$0]  %s2183_s6, 1024, %s64_s16, [#allocation9], %s1669_s1, %s1669_s1, %s1670_s20  }
  0x44   :  { %1658 = dma.done.wait [#allocation3], 128  }
  0x45   :  { %1659 = vsyncadd [#allocation3], 4294967168 }
  0x46   :  { %1660 = dma.done.wait [#allocation6], 288  }
  0x47   :  { %1661 = vsyncadd [#allocation6], 4294967008 }
  0x48   :  { %1662 = dma.done.wait [#allocation9], 1024  }
  0x49   :  { %1663 = vsyncadd [#allocation9], 4294966272  ;;  %v132_v0 = vlaneseq  ;;  %v1672_v1 = vmov 0.0|0.0   ;;  %vm1673_vm0 = vmmov 0   ;;  %v1674_v2 = vmov 0.0   ;;  %v92_v5 = vld [vmem:[%s2182_s5] sm:$0xff] }
  0x4a   :  { %1388 = vmatprep.subr.bf16.mxu1 %v1672_v1  ;;  %1309 = vmatprep.mubr.msk.f32.mxu1 %vm1673_vm0, %v1674_v2  ;;  %v93_v6 = vld [vmem:[%s2182_s5 + $0x8] sm:$0xff]  ;;  %v94_v7 = vld [vmem:[%s2182_s5 + $0x10] sm:$0xff]  ;;  %v95_v9 = vld [vmem:[%s2182_s5 + $0x18] sm:$0xff]  ;;  %v1675_v32 = vmov 683565275   ;;  %s1681_s28 = smov 64  }
  0x4b   :  { %v1796_v3 = vshrl.u32 %v132_v0, 7  ;;  %v1389_v8 = vpack.c.bf16 %v93_v6, %v92_v5  ;;  %v1813_v10 = vld [vmem:[#allocation7] sm:$0xff]  ;;  %v1392_v11 = vpack.c.bf16 %v95_v9, %v94_v7  ;;  %v134_v12 = vld [vmem:[#allocation5] sm:$0x3]  ;;  %v96_v14 = vld [vmem:[%s2182_s5 + $0x20] sm:$0xff] }
  0x4c   :  { %v97_v15 = vld [vmem:[%s2182_s5 + $0x28] sm:$0xff]  ;;  %v98_v19 = vld [vmem:[%s2182_s5 + $0x30] sm:$0xff]  ;;  %v99_v20 = vld [vmem:[%s2182_s5 + $0x38] sm:$0xff]  ;;  %v1676_v34 = vmov 2475754826  }
  0x4d   :  { %v1799_v4 = vsub.s32 0, %v1796_v3  ;;  %1390 = vmatpush3.bf16.msra.mxu1 %v1389_v8  ;;  %v1395_v17 = vpack.c.bf16 %v97_v15, %v96_v14  ;;  %v1398_v23 = vpack.c.bf16 %v99_v20, %v98_v19  ;;  %v1677_v36 = vmov 2131351028  }
  0x4e   :  { %1391 = vmatprep.subr.bf16.mxu1 %v1672_v1  ;;  %v1678_v38 = vmov 2102212464   ;;  %v1679_v40 = vmov 920167782   ;;  %v1680_v47 = vmov 1326507024  }
  0x4f   :  { %v138_v13 = vrot.slane %v1813_v10, %v1799_v4 }
  0x51   :  { %v1824_v16 = vmul.f32 %v138_v13, %v134_v12  ;;  %1393 = vmatpush3.bf16.msra.mxu1 %v1392_v11 }
  0x52   :  { %1394 = vmatprep.subr.bf16.mxu1 %v1672_v1 }
  0x53   :  { %v144_v18 = vand.u32 2139095040, %v1824_v16  ;;  %v141_v22 = vand.u32 2147483647, %v1824_v16  ;;  %vm143_vm8 = vcmp.lt.s32.totalorder %v1824_v16, 0 }
  0x55   :  { %v145_v21 = vshrl.u32 %v144_v18, 23  ;;  %1396 = vmatpush3.bf16.msra.mxu1 %v1395_v17  ;;  %v148_v26 = vand.u32 8388607, %v141_v22  ;;  %vm142_vm9 = vcmp.le.f32.partialorder %v141_v22, 0.7853982 }
  0x56   :  { %1397 = vmatprep.subr.bf16.mxu1 %v1672_v1 }
  0x57   :  { %v1194_v24 = vadd.s32 4294967169, %v145_v21  ;;  %v149_v29 = vor.u32 8388608, %v148_v26 }
  0x59   :  { %v151_v25 = vadd.s32 1, %v1194_v24  ;;  %1399 = vmatpush3.bf16.msra.mxu1 %v1398_v23  ;;  %v189_v49 = vshll.u32 %v149_v29, 8 }
  0x5a   :  { %1400 = vmatprep.subr.bf16.mxu1 %v1672_v1 }
  0x5b   :  { %vm152_vm1 = vcmp.gt.s32.totalorder %v151_v25, 0 }
  0x5c   :  { %v153_v27 = vsel %vm152_vm1, %v151_v25, 0  ;;  %vm233_vm1 = vweird.f32 %v1824_v16 }
  0x5d   :  { %v155_v28 = vand.u32 31, %v153_v27  ;;  %v154_v30 = vshrl.u32 %v153_v27, 5 }
  0x5f   :  { %v156_v31 = vsub.s32 32, %v155_v28  ;;  %v158_v33 = vshll.u32 %v1675_v32, %v155_v28  ;;  %v161_v35 = vshll.u32 %v1676_v34, %v155_v28  ;;  %v164_v37 = vshll.u32 %v1677_v36, %v155_v28 }
  0x60   :  { %v167_v39 = vshll.u32 %v1678_v38, %v155_v28  ;;  %v170_v41 = vshll.u32 %v1679_v40, %v155_v28  ;;  %vm173_vm2 = vcmp.lt.s32.totalorder %v154_v30, 1  ;;  %vm176_vm3 = vcmp.lt.s32.totalorder %v154_v30, 4 }
  0x61   :  { %v157_v42 = vshrl.u32 %v1675_v32, %v156_v31  ;;  %v159_v43 = vshrl.u32 %v1676_v34, %v156_v31  ;;  %v162_v44 = vshrl.u32 %v1677_v36, %v156_v31  ;;  %v165_v45 = vshrl.u32 %v1678_v38, %v156_v31 }
  0x62   :  { %v168_v46 = vshrl.u32 %v1679_v40, %v156_v31  ;;  %v171_v48 = vshrl.u32 %v1680_v47, %v156_v31  ;;  %vm174_vm4 = vcmp.lt.s32.totalorder %v154_v30, 2  ;;  %vm175_vm5 = vcmp.lt.s32.totalorder %v154_v30, 3 }
  0x63   :  { %v160_v50 = vor.u32 %v159_v43, %v158_v33  ;;  %v163_v51 = vor.u32 %v162_v44, %v161_v35  ;;  %v166_v52 = vor.u32 %v165_v45, %v164_v37 }
  0x64   :  { %v169_v53 = vor.u32 %v168_v46, %v167_v39  ;;  %v172_v54 = vor.u32 %v171_v48, %v170_v41 }
  0x65   :  { %v177_v55 = vsel %vm173_vm2, %v157_v42, %v160_v50  ;;  %v178_v56 = vsel %vm176_vm3, %v166_v52, 2102212464  ;;  %v181_v57 = vsel %vm173_vm2, %v160_v50, %v163_v51  ;;  %v185_v58 = vsel %vm173_vm2, %v163_v51, %v166_v52 }
  0x66   :  { %v179_v59 = vsel %vm175_vm5, %v163_v51, %v178_v56  ;;  %v182_v60 = vsel %vm176_vm3, %v169_v53, 920167782  ;;  %v186_v61 = vsel %vm176_vm3, %v172_v54, 1326507024  ;;  %v133_v50 = vand.u32 127, %v132_v0 }
  0x67   :  { %v183_v62 = vsel %vm175_vm5, %v166_v52, %v182_v60  ;;  %v187_v63 = vsel %vm175_vm5, %v169_v53, %v186_v61  ;;  %v180_v5 = vsel %vm174_vm4, %v177_v55, %v179_v59  ;;  %v349_v0 = vld [vmem:[%s2179_s2] sm:$0x3]  ;;  %vm355_vm3 = vcmask 523264  }
  0x68   :  { %v184_v6 = vsel %vm174_vm4, %v181_v57, %v183_v62  ;;  %v188_v7 = vsel %vm174_vm4, %v185_v58, %v187_v63  ;;  %v196_v13 = vmul.u32 %v189_v49, %v180_v5  ;;  %vm140_vm2 = vcmp.lt.s32.totalorder %v133_v50, 32 }
  0x69   :  { %v1839_v8 = vmul.u32.u64.low %v189_v49, %v188_v7  ;;  %v1840_v9 = vmul.u32.u64.high %v189_v49, %v188_v7, %v1839_v8  ;;  %v1842_v11 = vmul.u32.u64.low %v189_v49, %v184_v6  ;;  %v1843_v12 = vmul.u32.u64.high %v189_v49, %v184_v6, %v1842_v11 }
  0x6a   :  { %vm430_vm4 = vcmask 517120  }
  0x6b   :  { %vm198_vm6 = vc.u32 %v1840_v9, %v1842_v11  ;;  %v199_v14 = vadd.s32 1, %v1843_v12  ;;  %v197_v27 = vadd.s32 %v1842_v11, %v1840_v9 }
  0x6d   :  { %v200_v15 = vsel %vm198_vm6, %v199_v14, %v1843_v12 }
  0x6e   :  { %v201_v17 = vadd.s32 %v200_v15, %v196_v13 }
  0x70   :  { %v202_v18 = vadd.s32 536870912, %v201_v17 }
  0x72   :  { %v203_v19 = vshrl.u32 %v202_v18, 30  ;;  %v1171_v18 = vld [vmem:[%s2182_s5 + $0x48] sm:$0xff] }
  0x74   :  { %v204_v20 = vshll.u32 %v203_v19, 30  ;;  %v227_v39 = vsub.s32 4, %v203_v19 }
  0x76   :  { %v205_v21 = vsub.s32 %v201_v17, %v204_v20  ;;  %v228_v42 = vsel %vm143_vm8, %v227_v39, %v203_v19  ;;  %v1170_v17 = vld [vmem:[%s2182_s5 + $0x40] sm:$0xff] }
  0x77   :  { %v230_v45 = vsel %vm142_vm9, 0, %v228_v42  ;;  %v532_v19 = vld [vmem:[#allocation8] sm:$0xff]  ;;  %v1401_v20 = vpack.c.bf16 %v1171_v18, %v1170_v17  ;;  %v457_v18 = vsub.s32 4, %v1796_v3 }
  0x78   :  { %v207_v23 = vsub.s32 0, %v205_v21  ;;  %v234_v46 = vadd.s32 3, %v230_v45  ;;  %v338_v48 = vand.u32 3, %v230_v45  ;;  %v127_v42 = vld [vmem:[%s2177_s0] sm:$0xff] }
  0x7a   :  { %v1195_v24 = vmin.u32 %v207_v23, %v205_v21  ;;  %v235_v47 = vand.u32 3, %v234_v46  ;;  %vm343_vm11 = vcmp.eq.s32.totalorder %v338_v48, 2  ;;  %vm340_vm13 = vcmp.eq.s32.totalorder %v338_v48, 0 }
  0x7b   :  { %vm339_vm15 = vcmp.lt.s32.totalorder %v338_v48, 2  ;;  %v1187_v48 = vld [vmem:[%s2182_s5 + $0xc8] sm:$0xff] }
  0x7c   :  { %v209_v25 = vclz %v1195_v24  ;;  %vm240_vm10 = vcmp.eq.s32.totalorder %v235_v47, 2  ;;  %vm237_vm12 = vcmp.eq.s32.totalorder %v235_v47, 0  ;;  %vm236_vm14 = vcmp.lt.s32.totalorder %v235_v47, 2  ;;  %v1172_v24 = vld [vmem:[%s2182_s5 + $0x50] sm:$0xff]  ;;  %v1186_v47 = vld [vmem:[%s2182_s5 + $0xc0] sm:$0xff] }
  0x7e   :  { %v1196_v26 = vadd.s32 4294967294, %v209_v25  ;;  %v1173_v25 = vld [vmem:[%s2182_s5 + $0x58] sm:$0xff] }
  0x80   :  { %vm1197_vm7 = vcmp.lt.s32.totalorder %v1196_v26, 0 }
  0x81   :  { %v212_v28 = vsel %vm1197_vm7, 0, %v1196_v26  ;;  %v534_v26 = vld [vmem:[#allocation8 + $0x10] sm:$0xff] }
  0x82   :  { %v213_v29 = vsub.s32 32, %v212_v28  ;;  %v214_v30 = vshll.u32 %v205_v21, %v212_v28  ;;  %v217_v31 = vsub.s32 4294967266, %v212_v28  ;;  %v533_v21 = vld [vmem:[#allocation8 + $0x8] sm:$0xff]  ;;  %v535_v28 = vld [vmem:[#allocation8 + $0x18] sm:$0xff] }
  0x83   :  { %v1412_v23 = vpack.c.bf16 %v533_v21, %v532_v19 }
  0x84   :  { %v215_v32 = vshrl.u32 %v197_v27, %v213_v29  ;;  %v218_v33 = vadd.s32 127, %v217_v31  ;;  %v1404_v27 = vpack.c.bf16 %v1173_v25, %v1172_v24  ;;  %v1416_v29 = vpack.c.bf16 %v535_v28, %v534_v26  ;;  %v1175_v31 = vld [vmem:[%s2182_s5 + $0x68] sm:$0xff] }
  0x85   :  { %1413 = vmatprep.subr.bf16.mxu0 %v1412_v23 }
  0x86   :  { %v216_v34 = vor.u32 %v215_v32, %v214_v30  ;;  %v219_v35 = vshll.u32 %v218_v33, 23  ;;  %1415 = vmatpush3.bf16.msra.mxu0 %v1412_v23  ;;  %v1174_v30 = vld [vmem:[%s2182_s5 + $0x60] sm:$0xff] }
  0x87   :  { %1417 = vmatprep.subr.bf16.mxu0 %v1416_v29  ;;  %v536_v32 = vld [vmem:[#allocation8 + $0x20] sm:$0xff]  ;;  %v1407_v33 = vpack.c.bf16 %v1175_v31, %v1174_v30 }
  0x88   :  { %v220_v36 = vor.u32 4788187, %v219_v35  ;;  %v223_v37 = vcvt.s32.f32 %v216_v34  ;;  %v537_v34 = vld [vmem:[#allocation8 + $0x28] sm:$0xff] }
  0x89   :  { %v1420_v35 = vpack.c.bf16 %v537_v34, %v536_v32  ;;  %v1178_v34 = vld [vmem:[%s2182_s5 + $0x80] sm:$0xff] }
  0x8a   :  { %v221_v38 = vand.u32 2147483647, %v220_v36  ;;  %1419 = vmatpush3.bf16.msra.mxu0 %v1416_v29  ;;  %v1176_v36 = vld [vmem:[%s2182_s5 + $0x70] sm:$0xff] }
  0x8b   :  { %1421 = vmatprep.subr.bf16.mxu0 %v1420_v35 }
  0x8c   :  { %v224_v40 = vmul.f32 %v223_v37, %v221_v38  ;;  %v1177_v37 = vld [vmem:[%s2182_s5 + $0x78] sm:$0xff]  ;;  %v538_v38 = vld [vmem:[#allocation8 + $0x30] sm:$0xff] }
  0x8d   :  { %v1410_v39 = vpack.c.bf16 %v1177_v37, %v1176_v36  ;;  %v1180_v37 = vld [vmem:[%s2182_s5 + $0x90] sm:$0xff] }
  0x8e   :  { %v225_v41 = vxor.u32 2147483648, %v224_v40  ;;  %1423 = vmatpush3.bf16.msra.mxu0 %v1420_v35  ;;  %v1179_v35 = vld [vmem:[%s2182_s5 + $0x88] sm:$0xff] }
  0x8f   :  { %v1445_v36 = vpack.c.bf16 %v1179_v35, %v1178_v34 }
  0x90   :  { %v226_v43 = vsel %vm143_vm8, %v225_v41, %v224_v40  ;;  %v539_v40 = vld [vmem:[#allocation8 + $0x38] sm:$0xff] }
  0x91   :  { %v229_v44 = vsel %vm142_vm9, %v1824_v16, %v226_v43  ;;  %v1862_v16 = vsub.s32 1, %v1796_v3  ;;  %v1424_v41 = vpack.c.bf16 %v539_v40, %v538_v38  ;;  %v129_v43 = vld [vmem:[#allocation2] sm:$0xff]  ;;  %v1181_v38 = vld [vmem:[%s2182_s5 + $0x98] sm:$0xff]  ;;  %v1183_v40 = vld [vmem:[%s2182_s5 + $0xa8] sm:$0xff] }
  0x92   :  { %1526 = vcosq.f32 %v229_v44  ;;  %v130_v45 = vadd.f32 %v129_v43, %v127_v42  ;;  %v1184_v42 = vld [vmem:[%s2182_s5 + $0xb0] sm:$0xff] }
  0x93   :  { %1528 = vsinq.f32 %v229_v44  ;;  %v354_v63 = vrot.slane %v1813_v10, %v1862_v16  ;;  %1425 = vmatprep.subr.bf16.mxu0 %v1424_v41  ;;  %v128_v44 = vld [vmem:[%s2177_s0 + $0x8] sm:$0xff] }
  0x94   :  { %1427 = vmatpush3.bf16.msra.mxu0 %v1424_v41  ;;  %v131_v46 = vadd.f32 %v129_v43, %v128_v44  ;;  %1347 = vmatprep.mubr.msk.f32.mxu0 %vm355_vm3, %v130_v45  ;;  %v1185_v43 = vld [vmem:[%s2182_s5 + $0xb8] sm:$0xff] }
  0x95   :  { %1444 = vmatprep.subr.bf16.mxu0 %v1672_v1  ;;  %v1454_v44 = vpack.c.bf16 %v1185_v43, %v1184_v42 }
  0x97   :  { %1348 = vmatmul.mubr.msk.f32.vlgmr.msra.gmra.mrb[0].mxu0 %vm355_vm3, %v131_v46 }
  0x98   :  { %1385 = vmatprep.mubr.msk.f32.mxu0 %vm1673_vm0, %v1674_v2  ;;  %1446 = vmatpush3.bf16.msra.mxu0 %v1445_v36 }
  0x99   :  { %1447 = vmatprep.subr.bf16.mxu0 %v1672_v1 }
  0x9c   :  { %v1527_v49 = vpop.eup %1526 }
  0x9d   :  { %v1529_v51 = vpop.eup %1528  ;;  %v241_v52 = vxor.u32 2147483648, %v1527_v49 }
  0x9e   :  { %v238_v22 = vxor.u32 2147483648, %v1529_v51 }
  0x9f   :  { %v242_v53 = vsel %vm240_vm10, %v241_v52, %v1529_v51  ;;  %v345_v54 = vsel %vm343_vm11, %v241_v52, %v1529_v51 }
  0xa0   :  { %v239_v55 = vsel %vm237_vm12, %v1527_v49, %v238_v22  ;;  %v342_v56 = vsel %vm340_vm13, %v1527_v49, %v238_v22  ;;  %v1428_v49 = vpack.c.bf16 %v1187_v48, %v1186_v47  ;;  %v447_v22 = vsub.s32 2, %v1796_v3 }
  0xa1   :  { %v243_v57 = vsel %vm236_vm14, %v239_v55, %v242_v53  ;;  %v346_v58 = vsel %vm339_vm15, %v342_v56, %v345_v54  ;;  %v452_v53 = vsub.s32 3, %v1796_v3 }
  0xa2   :  { %v244_v59 = vsel %vm233_vm1, nan, %v243_v57  ;;  %v347_v60 = vsel %vm233_vm1, nan, %v346_v58  ;;  %v448_v54 = vrot.slane %v1813_v10, %v447_v22 }
  0xa3   :  { %v348_v61 = vsel %vm140_vm2, %v244_v59, %v347_v60  ;;  %v453_v57 = vrot.slane %v1813_v10, %v452_v53  ;;  %v1188_v59 = vld [vmem:[%s2182_s5 + $0xd0] sm:$0xff]  ;;  %v1189_v60 = vld [vmem:[%s2182_s5 + $0xd8] sm:$0xff] }
  0xa4   :  { %v350_v62 = vadd.f32 %v349_v0, %v348_v61  ;;  %v1432_v61 = vpack.c.bf16 %v1189_v60, %v1188_v59 }
  0xa6   :  { %1310 = vmatmul.mubr.msk.f32.vlgmr.msra.gmra.mrb[0].mxu1 %vm355_vm3, %v350_v62 }
  0xa7   :  { %1328 = vmatprep.mubr.msk.f32.mxu1 %vm1673_vm0, %v1674_v2  ;;  %1402 = vmatpush3.bf16.msra.mxu1 %v1401_v20  ;;  %v458_v20 = vrot.slane %v1813_v10, %v457_v18  ;;  %vm812_vm0 = vcmask 1041409  }
  0xa8   :  { %1403 = vmatprep.subr.bf16.mxu1 %v1672_v1 }
  0xab   :  { %1405 = vmatpush3.bf16.msra.mxu1 %v1404_v27 }
  0xac   :  { %1406 = vmatprep.subr.bf16.mxu1 %v1672_v1 }
  0xaf   :  { %1408 = vmatpush3.bf16.msra.mxu1 %v1407_v33 }
  0xb0   :  { %1409 = vmatprep.subr.bf16.mxu1 %v1672_v1 }
  0xb3   :  { %1411 = vmatpush3.bf16.msra.mxu1 %v1410_v39  ;;  %v1448_v39 = vpack.c.bf16 %v1181_v38, %v1180_v37 }
  0xb4   :  { %1429 = vmatprep.subr.bf16.mxu1 %v1428_v49 }
  0xb5   :  { %1449 = vmatpush3.bf16.msra.mxu0 %v1448_v39 }
  0xb6   :  { %1450 = vmatprep.subr.bf16.mxu0 %v1672_v1 }
 0x179   :  { %v425_v5 = vpop.f32.mrb[0].mxu1 }
 0x17a   :  { %v426_v6 = vadd.f32 %v425_v5, %v354_v63  ;;  %v1311_v7 = vpop.f32.mrb[1].mxu1  ;;  %v1204_v63 = vld [vmem:[%s2184_s7] ss:$0 sm:$0xff] }
 0x17b   :  { %v1190_v5 = vld [vmem:[%s2182_s5 + $0xe0] sm:$0xff] }
 0x17c   :  { %v429_v8 = vadd.f32 %v426_v6, %v350_v62  ;;  %v1349_v62 = vpop.f32.mrb[0].mxu0  ;;  %v1191_v6 = vld [vmem:[%s2182_s5 + $0xe8] sm:$0xff] }
 0x17d   :  { %v619_v7 = vpop.f32.mrb[1].mxu0 }
 0x17e   :  { %v431_v9 = vsel %vm430_vm4, %v429_v8, 0.0 }
 0x17f   :  { %432 = vadd.xlane.f32.xlu0 %v431_v9  ;;  %v620_v9 = vadd.f32 %v1204_v63, %v619_v7 }
 0x181   :  { %784 = vrot.lane.b32.xlu1 %v620_v9, %s1681_s28 }
 0x20c   :  { %v433_v11 = vpop.xlane.xlu0 %432 }
 0x20d   :  { %v435_v12 = vmul.f32 0.015625, %v433_v11  ;;  %v625_v11 = vadd.f32 %v1349_v62, %v1204_v63 }
 0x20f   :  { %v1867_v13 = vsub.f32 %v429_v8, %v435_v12  ;;  %v1436_v8 = vpack.c.bf16 %v1191_v6, %v1190_v5  ;;  %v1192_v12 = vld [vmem:[%s2182_s5 + $0xf0] sm:$0xff]  ;;  %786 = vrot.lane.b32.xlu1 %v625_v11, %s1681_s28 }
 0x211   :  { %v437_v14 = vmul.f32 %v1867_v13, %v1867_v13 }
 0x213   :  { %v438_v15 = vsel %vm430_vm4, %v437_v14, 0.0 }
 0x214   :  { %439 = vadd.xlane.f32.xlu0 %v438_v15  ;;  %v1682_v15 = vmov 1966171168  }
 0x215   :  { %v630_v17 = vunpack.c.l.s4 %v1682_v15 }
 0x217   :  { %v631_v19 = vunpack.c.0.s8 %v630_v17 }
 0x219   :  { %v634_v21 = vsub.s32 %v631_v19, %v1796_v3 }
 0x2a1   :  { %v440_v50 = vpop.xlane.xlu0 %439 }
 0x2a2   :  { %v441_v51 = vmul.f32 0.015625, %v440_v50 }
 0x2a4   :  { %v442_v52 = vadd.f32 1e-05, %v441_v51 }
 0x2a6   :  { %1530 = vrsqrt.f32 %v442_v52 }
 0x2b0   :  { %v1531_v55 = vpop.eup %1530 }
 0x2b1   :  { %v444_v56 = vmul.f32 %v1531_v55, %v1867_v13  ;;  %v1193_v13 = vld [vmem:[%s2182_s5 + $0xf8] sm:$0xff] }
 0x2b2   :  { %v1440_v14 = vpack.c.bf16 %v1193_v13, %v1192_v12 }
 0x2b3   :  { %v449_v58 = vmul.f32 %v448_v54, %v444_v56 }
 0x2b5   :  { %v1923_v0 = vadd.f32 %v453_v57, %v449_v58 }
 0x2b7   :  { %1329 = vmatmul.mubr.msk.f32.vlgmr.msra.gmra.mrb[2].mxu1 %vm355_vm3, %v1923_v0 }
 0x2b8   :  { %1431 = vmatpush3.bf16.msra.mxu1 %v1428_v49 }
 0x2b9   :  { %1433 = vmatprep.subr.bf16.mxu1 %v1432_v61 }
 0x2bc   :  { %1435 = vmatpush3.bf16.msra.mxu1 %v1432_v61 }
 0x2bd   :  { %1437 = vmatprep.subr.bf16.mxu1 %v1436_v8 }
 0x2c0   :  { %1439 = vmatpush3.bf16.msra.mxu1 %v1436_v8 }
 0x2c1   :  { %1441 = vmatprep.subr.bf16.mxu1 %v1440_v14 }
 0x2c4   :  { %1443 = vmatpush3.bf16.msra.mxu1 %v1440_v14 }
 0x38a   :  { %v528_v23 = vpop.f32.mrb[2].mxu1 }
 0x38b   :  { %v529_v24 = vadd.f32 %v528_v23, %v458_v20  ;;  %v1330_v25 = vpop.f32.mrb[3].mxu1 }
 0x38d   :  { %v635_v26 = vrot.slane %v529_v24, %v634_v21  ;;  %v785_v24 = vpop.permute.xlu1 %784 }
 0x38f   :  { %v636_v27 = vcombine.high %v635_v26, %v635_v26  ;;  %v643_v28 = vrot.slane %v635_v26, %v634_v21 }
 0x391   :  { %v650_v29 = vrot.slane %v636_v27, %v634_v21  ;;  %v654_v30 = vrot.slane %v643_v28, %v1799_v4  ;;  %v787_v28 = vpop.permute.xlu1 %786 }
 0x393   :  { %v658_v31 = vrot.slane %v650_v29, %v1799_v4  ;;  %v661_v32 = vmul.f32 %v654_v30, %v620_v9 }
 0x395   :  { %v662_v33 = vmul.f32 %v658_v31, %v625_v11  ;;  %1366 = vmatprep.mubr.msk.f32.mxu1 %vm355_vm3, %v661_v32 }
 0x397   :  { %1367 = vmatmul.mubr.msk.f32.vlgmr.msra.gmra.mrb[4].mxu1 %vm355_vm3, %v662_v33 }
 0x398   :  { %1005 = vmatprep.mubr.f32.mxu1 %v1674_v2  ;;  %v1182_v2 = vld [vmem:[%s2182_s5 + $0xa0] sm:$0xff] }
 0x399   :  { %v1451_v41 = vpack.c.bf16 %v1183_v40, %v1182_v2 }
 0x39b   :  { %1452 = vmatpush3.bf16.msra.mxu0 %v1451_v41 }
 0x39c   :  { %1453 = vmatprep.subr.bf16.mxu0 %v1672_v1 }
 0x39f   :  { %1455 = vmatpush3.bf16.msra.mxu0 %v1454_v44 }
 0x46a   :  { %v1368_v45 = vpop.f32.mrb[4].mxu1 }
 0x46b   :  { %v751_v46 = vsel %vm355_vm3, %v1368_v45, -inf  ;;  %v735_v47 = vpop.f32.mrb[5].mxu1 }
 0x46c   :  { %v752_v48 = vrot.slane %v751_v46, 4  ;;  %v744_v49 = vsel %vm355_vm3, %v735_v47, -inf }
 0x46d   :  { %v745_v50 = vrot.slane %v744_v49, 4 }
 0x46e   :  { %v753_v51 = vmax.f32 %v751_v46, %v752_v48  ;;  %v808_v46 = vsub.s32 5, %v1796_v3 }
 0x46f   :  { %v746_v52 = vmax.f32 %v744_v49, %v745_v50 }
 0x470   :  { %v754_v53 = vrot.slane %v753_v51, 2 }
 0x471   :  { %v747_v54 = vrot.slane %v746_v52, 2 }
 0x472   :  { %v755_v55 = vmax.f32 %v753_v51, %v754_v53 }
 0x473   :  { %v748_v56 = vmax.f32 %v746_v52, %v747_v54 }
 0x474   :  { %v756_v57 = vrot.slane %v755_v55, 1 }
 0x475   :  { %v749_v58 = vrot.slane %v748_v56, 1 }
 0x476   :  { %v757_v59 = vmax.f32 %v755_v55, %v756_v57 }
 0x477   :  { %v750_v60 = vmax.f32 %v748_v56, %v749_v58  ;;  %v911_v58 = vld [vmem:[%s2185_s8 + $0x8] sm:$0xff] }
 0x478   :  { %v759_v1 = vsub.f32 %v1368_v45, %v757_v59 }
 0x479   :  { %v758_v61 = vsub.f32 %v735_v47, %v750_v60  ;;  %v809_v47 = vrot.slane %v1813_v10, %v808_v46  ;;  %v910_v60 = vld [vmem:[%s2185_s8] sm:$0xff] }
 0x47a   :  { %v762_v62 = vmul.f32 1.442695, %v759_v1  ;;  %v912_v1 = vld [vmem:[%s2185_s8 + $0x10] sm:$0xff] }
 0x47b   :  { %v760_v63 = vmul.f32 1.442695, %v758_v61  ;;  %v1458_v61 = vpack.c.bf16 %v912_v1, %v910_v60  ;;  %v1031_v60 = vld [vmem:[%s2187_s10 + $0x48] sm:$0xff] }
 0x47c   :  { %1532 = vpow2.f32 %v762_v62  ;;  %v915_v62 = vld [vmem:[%s2185_s8 + $0x28] sm:$0xff] }
 0x47d   :  { %1534 = vpow2.f32 %v760_v63  ;;  %v917_v63 = vld [vmem:[%s2185_s8 + $0x38] sm:$0xff] }
 0x486   :  { %v1533_v5 = vpop.eup %1532 }
 0x487   :  { %v1535_v6 = vpop.eup %1534  ;;  %v771_v7 = vsel %vm355_vm3, %v1533_v5, 0.0 }
 0x488   :  { %v772_v8 = vrot.slane %v771_v7, 4  ;;  %v764_v9 = vsel %vm355_vm3, %v1535_v6, 0.0 }
 0x489   :  { %v765_v11 = vrot.slane %v764_v9, 4 }
 0x48a   :  { %v773_v12 = vadd.f32 %v772_v8, %v771_v7  ;;  %v916_v7 = vld [vmem:[%s2185_s8 + $0x30] sm:$0xff] }
 0x48b   :  { %v766_v13 = vadd.f32 %v765_v11, %v764_v9  ;;  %v919_v9 = vld [vmem:[%s2185_s8 + $0x48] sm:$0xff]  ;;  %v921_v11 = vld [vmem:[%s2185_s8 + $0x58] sm:$0xff] }
 0x48c   :  { %v774_v14 = vrot.slane %v773_v12, 2 }
 0x48d   :  { %v767_v15 = vrot.slane %v766_v13, 2 }
 0x48e   :  { %v775_v17 = vadd.f32 %v774_v14, %v773_v12  ;;  %v1464_v12 = vpack.c.bf16 %v921_v11, %v919_v9  ;;  %v920_v14 = vld [vmem:[%s2185_s8 + $0x50] sm:$0xff]  ;;  %v1051_v9 = vld [vmem:[%s2187_s10 + $0xe8] sm:$0xff] }
 0x48f   :  { %v768_v18 = vadd.f32 %v767_v15, %v766_v13  ;;  %v918_v13 = vld [vmem:[%s2185_s8 + $0x40] sm:$0xff] }
 0x490   :  { %v776_v19 = vrot.slane %v775_v17, 1  ;;  %v1466_v15 = vpack.c.bf16 %v920_v14, %v918_v13  ;;  %v1035_v13 = vld [vmem:[%s2187_s10 + $0x68] sm:$0xff] }
 0x491   :  { %v769_v20 = vrot.slane %v768_v18, 1 }
 0x492   :  { %v777_v21 = vadd.f32 %v776_v19, %v775_v17  ;;  %v923_v17 = vld [vmem:[%s2185_s8 + $0x68] sm:$0xff] }
 0x493   :  { %v770_v23 = vadd.f32 %v769_v20, %v768_v18  ;;  %v925_v18 = vld [vmem:[%s2185_s8 + $0x78] sm:$0xff]  ;;  %v922_v20 = vld [vmem:[%s2185_s8 + $0x60] sm:$0xff] }
 0x494   :  { %1536 = vrcp.f32 %v777_v21  ;;  %v1468_v19 = vpack.c.bf16 %v925_v18, %v923_v17  ;;  %v924_v21 = vld [vmem:[%s2185_s8 + $0x70] sm:$0xff]  ;;  %v1053_v17 = vld [vmem:[%s2187_s10 + $0xf8] sm:$0xff] }
 0x495   :  { %1538 = vrcp.f32 %v770_v23  ;;  %v1470_v23 = vpack.c.bf16 %v924_v21, %v922_v20  ;;  %v1037_v20 = vld [vmem:[%s2187_s10 + $0x78] sm:$0xff] }
 0x49e   :  { %v1537_v25 = vpop.eup %1536 }
 0x49f   :  { %v1539_v26 = vpop.eup %1538  ;;  %v781_v27 = vmul.f32 %v1537_v25, %v1533_v5  ;;  %v1460_v5 = vpack.c.bf16 %v917_v63, %v915_v62  ;;  %v1039_v25 = vld [vmem:[%s2187_s10 + $0x88] sm:$0xff]  ;;  %v1049_v62 = vld [vmem:[%s2187_s10 + $0xd8] sm:$0xff] }
 0x4a0   :  { %v779_v29 = vmul.f32 %v1539_v26, %v1535_v6  ;;  %v914_v6 = vld [vmem:[%s2185_s8 + $0x20] sm:$0xff] }
 0x4a1   :  { %v791_v30 = vmul.f32 %v787_v28, %v781_v27  ;;  %v1462_v8 = vpack.c.bf16 %v916_v7, %v914_v6  ;;  %v1022_v26 = vld [vmem:[%s2187_s10] sm:$0xff]  ;;  %v1023_v28 = vld [vmem:[%s2187_s10 + $0x8] sm:$0xff]  ;;  %v1033_v6 = vld [vmem:[%s2187_s10 + $0x58] sm:$0xff] }
 0x4a2   :  { %v790_v31 = vmul.f32 %v785_v24, %v779_v29  ;;  %v1038_v24 = vld [vmem:[%s2187_s10 + $0x80] sm:$0xff]  ;;  %v1040_v29 = vld [vmem:[%s2187_s10 + $0x90] sm:$0xff] }
 0x4a3   :  { %v799_v32 = vsel %vm355_vm3, %v791_v30, 0.0  ;;  %v1472_v27 = vpack.c.bf16 %v1039_v25, %v1038_v24  ;;  %v1041_v30 = vld [vmem:[%s2187_s10 + $0x98] sm:$0xff] }
 0x4a4   :  { %v792_v33 = vsel %vm355_vm3, %v790_v31, 0.0  ;;  %v800_v34 = vrot.slane %v799_v32, 4  ;;  %v1474_v31 = vpack.c.bf16 %v1023_v28, %v1022_v26 }
 0x4a5   :  { %v793_v35 = vrot.slane %v792_v33, 4  ;;  %1473 = vmatprep.subr.bf16.mxu0 %v1472_v27 }
 0x4a6   :  { %v801_v36 = vadd.f32 %v800_v34, %v799_v32  ;;  %v1476_v32 = vpack.c.bf16 %v1041_v30, %v1040_v29  ;;  %v1025_v34 = vld [vmem:[%s2187_s10 + $0x18] sm:$0xff] }
 0x4a7   :  { %v794_v37 = vadd.f32 %v793_v35, %v792_v33  ;;  %v1024_v33 = vld [vmem:[%s2187_s10 + $0x10] sm:$0xff]  ;;  %v1042_v35 = vld [vmem:[%s2187_s10 + $0xa0] sm:$0xff] }
 0x4a8   :  { %v802_v38 = vrot.slane %v801_v36, 2 }
 0x4a9   :  { %v795_v39 = vrot.slane %v794_v37, 2 }
 0x4aa   :  { %v803_v2 = vadd.f32 %v802_v38, %v801_v36  ;;  %v1043_v36 = vld [vmem:[%s2187_s10 + $0xa8] sm:$0xff] }
 0x4ab   :  { %v796_v40 = vadd.f32 %v795_v39, %v794_v37  ;;  %v1478_v37 = vpack.c.bf16 %v1025_v34, %v1024_v33  ;;  %v1480_v38 = vpack.c.bf16 %v1043_v36, %v1042_v35  ;;  %v1026_v39 = vld [vmem:[%s2187_s10 + $0x20] sm:$0xff] }
 0x4ac   :  { %v804_v41 = vrot.slane %v803_v2, 1 }
 0x4ad   :  { %v797_v42 = vrot.slane %v796_v40, 1 }
 0x4ae   :  { %v805_v43 = vadd.f32 %v804_v41, %v803_v2  ;;  %v1027_v2 = vld [vmem:[%s2187_s10 + $0x28] sm:$0xff] }
 0x4af   :  { %v798_v44 = vadd.f32 %v797_v42, %v796_v40  ;;  %v1482_v40 = vpack.c.bf16 %v1027_v2, %v1026_v39  ;;  %v91_v2 = vld [vmem:[#allocation7 + $0x8] sm:$0x7] }
 0x4b1   :  { %v813_v45 = vsel %vm812_vm0, %v805_v43, %v798_v44  ;;  %v902_v44 = vsub.s32 6, %v1796_v3 }
 0x4b2   :  { %1386 = vmatmul.mubr.msk.f32.vlgmr.msra.gmra.mrb[2].mxu0 %vm355_vm3, %v813_v45  ;;  %v907_v45 = vsub.s32 7, %v1796_v3 }
 0x4b3   :  { %1475 = vmatpush3.bf16.msra.mxu0 %v1474_v31  ;;  %v903_v46 = vrot.slane %v1813_v10, %v902_v44 }
 0x4b4   :  { %1477 = vmatprep.subr.bf16.mxu0 %v1476_v32 }
 0x4b7   :  { %1479 = vmatpush3.bf16.msra.mxu0 %v1478_v37 }
 0x4b8   :  { %1481 = vmatprep.subr.bf16.mxu0 %v1480_v38 }
 0x4bb   :  { %1483 = vmatpush3.bf16.msra.mxu0 %v1482_v40 }
 0x585   :  { %v882_v48 = vpop.f32.mrb[2].mxu0 }
 0x586   :  { %v883_v49 = vadd.f32 %v882_v48, %v809_v47  ;;  %v1387_v50 = vpop.f32.mrb[3].mxu0 }
 0x588   :  { %v886_v51 = vadd.f32 %v883_v49, %v1923_v0  ;;  %v913_v0 = vld [vmem:[%s2185_s8 + $0x18] sm:$0xff]  ;;  %v908_v49 = vrot.slane %v1813_v10, %v907_v45 }
 0x589   :  { %v1456_v59 = vpack.c.bf16 %v913_v0, %v911_v58  ;;  %v1029_v10 = vld [vmem:[%s2187_s10 + $0x38] sm:$0xff]  ;;  %v1047_v58 = vld [vmem:[%s2187_s10 + $0xc8] sm:$0xff] }
 0x58a   :  { %v887_v52 = vsel %vm430_vm4, %v886_v51, 0.0 }
 0x58b   :  { %888 = vadd.xlane.f32.xlu0 %v887_v52  ;;  %1457 = vmatprep.subr.bf16.mxu1 %v1456_v59  ;;  %v1044_v52 = vld [vmem:[%s2187_s10 + $0xb0] sm:$0xff]  ;;  %v1030_v59 = vld [vmem:[%s2187_s10 + $0x40] sm:$0xff] }
 0x58c   :  { %1459 = vmatpush1.bf16.msra.mxu1 %v1458_v61  ;;  %v1490_v1 = vpack.c.bf16 %v1031_v60, %v1030_v59  ;;  %v1048_v61 = vld [vmem:[%s2187_s10 + $0xd0] sm:$0xff] }
 0x58d   :  { %1461 = vmatprep.subr.bf16.mxu1 %v1460_v5  ;;  %v1492_v63 = vpack.c.bf16 %v1049_v62, %v1048_v61  ;;  %v1032_v5 = vld [vmem:[%s2187_s10 + $0x50] sm:$0xff] }
 0x58e   :  { %v1494_v7 = vpack.c.bf16 %v1033_v6, %v1032_v5 }
 0x590   :  { %1463 = vmatpush1.bf16.msra.mxu1 %v1462_v8  ;;  %v1050_v8 = vld [vmem:[%s2187_s10 + $0xe0] sm:$0xff] }
 0x591   :  { %1465 = vmatprep.subr.bf16.mxu1 %v1464_v12  ;;  %v1496_v11 = vpack.c.bf16 %v1051_v9, %v1050_v8  ;;  %v1034_v12 = vld [vmem:[%s2187_s10 + $0x60] sm:$0xff] }
 0x592   :  { %v1498_v14 = vpack.c.bf16 %v1035_v13, %v1034_v12 }
 0x594   :  { %1467 = vmatpush1.bf16.msra.mxu1 %v1466_v15  ;;  %v1052_v15 = vld [vmem:[%s2187_s10 + $0xf0] sm:$0xff] }
 0x595   :  { %1469 = vmatprep.subr.bf16.mxu1 %v1468_v19  ;;  %v1500_v18 = vpack.c.bf16 %v1053_v17, %v1052_v15  ;;  %v1036_v19 = vld [vmem:[%s2187_s10 + $0x70] sm:$0xff] }
 0x596   :  { %v1502_v21 = vpack.c.bf16 %v1037_v20, %v1036_v19 }
 0x598   :  { %1471 = vmatpush1.bf16.msra.mxu1 %v1470_v23  ;;  %v926_v23 = vld [vmem:[%s2186_s9] sm:$0x3]  ;;  %s1683_s9 = smov [#allocation10]  }
 0x599   :  { %v931_v24 = vrot.slane %v926_v23, %v1799_v4  ;;  %v935_v25 = vrot.slane %v926_v23, %v1862_v16 }
 0x618   :  { %v889_v53 = vpop.xlane.xlu0 %888 }
 0x619   :  { %v890_v54 = vmul.f32 0.015625, %v889_v53  ;;  %v1045_v53 = vld [vmem:[%s2187_s10 + $0xb8] sm:$0xff] }
 0x61b   :  { %v1994_v55 = vsub.f32 %v886_v51, %v890_v54  ;;  %v1484_v54 = vpack.c.bf16 %v1045_v53, %v1044_v52 }
 0x61d   :  { %v892_v56 = vmul.f32 %v1994_v55, %v1994_v55  ;;  %1485 = vmatprep.subr.bf16.mxu0 %v1484_v54 }
 0x61f   :  { %v893_v57 = vsel %vm430_vm4, %v892_v56, 0.0 }
 0x620   :  { %894 = vadd.xlane.f32.xlu1 %v893_v57  ;;  %v1046_v57 = vld [vmem:[%s2187_s10 + $0xc0] sm:$0xff] }
 0x621   :  { %v1488_v0 = vpack.c.bf16 %v1047_v58, %v1046_v57 }
 0x6ad   :  { %v895_v41 = vpop.xlane.xlu1 %894 }
 0x6ae   :  { %v896_v42 = vmul.f32 0.015625, %v895_v41  ;;  %v1057_v41 = vrot.slane %v91_v2, %v1799_v4  ;;  %v1145_v4 = vrot.slane %v91_v2, %v1862_v16 }
 0x6b0   :  { %v897_v43 = vadd.f32 1e-05, %v896_v42 }
 0x6b2   :  { %1540 = vrsqrt.f32 %v897_v43 }
 0x6bc   :  { %v1541_v47 = vpop.eup %1540 }
 0x6bd   :  { %v899_v48 = vmul.f32 %v1541_v47, %v1994_v55  ;;  %v1028_v55 = vld [vmem:[%s2187_s10 + $0x30] sm:$0xff]  ;;  %s1159_s10 = sshll.u32 %s1683_s9, 4  ;;  %s1160_s10 = int_to_ptr.vmem [resolvable:$true] %s1159_s10 }
 0x6be   :  { %v1486_v56 = vpack.c.bf16 %v1029_v10, %v1028_v55  ;;  %s1636_s14 = scalar_lea.vmem %s1160_s10, 32  ;;  %p1641_p5 = scmp.lt.s32.totalorder %s1160_s10, %s1160_s10 }
 0x6bf   :  { %v904_v50 = vmul.f32 %v903_v46, %v899_v48  ;;  %p1637_p4 = scmp.ne.s32.totalorder %s1160_s10, %s1636_s14  ;;  %p1642_p6 = scmp.lt.s32.totalorder %s1636_s14, %s1636_s14 }
 0x6c0   :  { %1487 = vmatpush3.bf16.msra.mxu0 %v1486_v56 }
 0x6c1   :  { %v2088_v51 = vadd.f32 %v908_v49, %v904_v50  ;;  %1489 = vmatprep.subr.bf16.mxu0 %v1488_v0  ;;  %p1643_p7 = por %p1642_p6, %p1641_p5 }
 0x6c3   :  { %1210 = vmatmul.mubr.msk.f32.vlgmr.msra.gmra.mrb[6].mxu1 %vm355_vm3, %v2088_v51  ;;  %p1644_p8 = pnand %p1643_p7, %p1637_p4 }
 0x6c4   :  { %1491 = vmatpush3.bf16.msra.mxu0 %v1490_v1 }
 0x6c5   :  { %1493 = vmatprep.subr.bf16.mxu0 %v1492_v63 }
 0x6c8   :  { %1495 = vmatpush3.bf16.msra.mxu0 %v1494_v7 }
 0x6c9   :  { %1497 = vmatprep.subr.bf16.mxu0 %v1496_v11 }
 0x6cc   :  { %1499 = vmatpush3.bf16.msra.mxu0 %v1498_v14 }
 0x6cd   :  { %1501 = vmatprep.subr.bf16.mxu0 %v1500_v18 }
 0x6d0   :  { %1503 = vmatpush3.bf16.msra.mxu0 %v1502_v21 }
 0x796   :  { %v1007_v26 = vpop.f32.mrb[6].mxu1 }
 0x797   :  { %v1008_v27 = vadd.f32 %v1007_v26, %v931_v24  ;;  %v1009_v28 = vpop.f32.mrb[7].mxu1 }
 0x798   :  { %v1010_v29 = vadd.f32 %v1009_v28, %v935_v25 }
 0x799   :  { %v1014_v30 = vmul.f32 0.70710677, %v1008_v27  ;;  %v1012_v37 = vmul.f32 0.5, %v1008_v27 }
 0x79a   :  { %v1015_v31 = vmul.f32 0.70710677, %v1010_v29  ;;  %v1013_v35 = vmul.f32 0.5, %v1010_v29 }
 0x79b   :  { %1542 = verf.f32 %v1014_v30 }
 0x79c   :  { %1544 = verf.f32 %v1015_v31 }
 0x7a5   :  { %v1543_v32 = vpop.eup %1542 }
 0x7a6   :  { %v1545_v33 = vpop.eup %1544  ;;  %v1018_v34 = vadd.f32 1.0, %v1543_v32 }
 0x7a7   :  { %v1019_v36 = vadd.f32 1.0, %v1545_v33 }
 0x7a8   :  { %v1020_v39 = vmul.f32 %v1018_v34, %v1012_v37 }
 0x7a9   :  { %v1021_v38 = vmul.f32 %v1019_v36, %v1013_v35 }
 0x7ab   :  { %1122 = vmatprep.mubr.f32.mxu0 %v1021_v38 }
 0x7ac   :  { %1123 = vmatmul.mubr.f32.vlgmr.msra.gmra.mrb[4].mxu0 %v1020_v39 }
 0x87f   :  { %v1290_v40 = vpop.f32.mrb[4].mxu0 }
 0x880   :  { %v1291_v42 = vpop.f32.mrb[5].mxu0 }
 0x881   :  { %v1292_v43 = vadd.f32 %v1291_v42, %v1290_v40 }
 0x883   :  { %v1125_v44 = vadd.f32 %v1292_v43, %v1057_v41 }
 0x885   :  { %v1128_v45 = vadd.f32 %v1125_v44, %v2088_v51  ;;  %v1150_v51 = vrot.slane %v91_v2, %v447_v22 }
 0x887   :  { %v1129_v46 = vsel %vm430_vm4, %v1128_v45, 0.0 }
 0x888   :  { %1130 = vadd.xlane.f32.xlu0 %v1129_v46 }
 0x915   :  { %v1131_v47 = vpop.xlane.xlu0 %1130 }
 0x916   :  { %v1132_v48 = vmul.f32 0.015625, %v1131_v47 }
 0x918   :  { %v1133_v49 = vsub.f32 %v1128_v45, %v1132_v48 }
 0x91a   :  { %v1134_v50 = vmul.f32 %v1133_v49, %v1133_v49 }
 0x91c   :  { %v1135_v52 = vsel %vm430_vm4, %v1134_v50, 0.0 }
 0x91d   :  { %1136 = vadd.xlane.f32.xlu0 %v1135_v52 }
 0x9aa   :  { %v1137_v53 = vpop.xlane.xlu0 %1136 }
 0x9ab   :  { %v1138_v54 = vmul.f32 0.015625, %v1137_v53 }
 0x9ad   :  { %v1139_v55 = vadd.f32 1e-05, %v1138_v54 }
 0x9af   :  { %1546 = vrsqrt.f32 %v1139_v55 }
 0x9b9   :  { %v1547_v10 = vpop.eup %1546 }
 0x9ba   :  { %v1141_v56 = vmul.f32 %v1547_v10, %v1133_v49 }
 0x9bc   :  { %v1146_v57 = vmul.f32 %v1145_v4, %v1141_v56 }
 0x9be   :  { %v1151_v58 = vadd.f32 %v1150_v51, %v1146_v57 }
 0x9c0   :  { %1152 = vst.msk [vmem:[#allocation10] sm:$0x3] %vm430_vm4, %v1151_v58 }
 0x9c1   :  { %1647 = shalt.err (!%p1644_p8)
}
 0x9c2   :  { %s1648_s17 = scalar_lea.hbm %s2188_s11, 32 }
 0x9c3   :  { %p1649_p9 = scmp.ne.s32.totalorder %s2188_s11, %s1648_s17  ;;  %p1652_p10 = scmp.lt.u32.totalorder %s1648_s17, %s2188_s11 }
 0x9c5   :  { %p1654_p11 = pnand %p1652_p10, %p1649_p9 }
 0x9c7   :  { %1657 = shalt.err (!%p1654_p11)
}
 0x9c8   :  { %1162 = dma.vmem_to_hbm [thread:$0]  %s1160_s10, 32, %s2188_s11, [#allocation4]  }
 0x9c9   :  { %1664 = dma.done.wait [#allocation4], 32  }
 0x9ca   :  { %1665 = vsyncadd [#allocation4], 4294967264 }
 0x9cb   :  { %1166 = vsyncpa [#allocation3], 1 }
 0x9cc   :  { %1167 = vsyncpa [#allocation6], 1 }
 0x9cd   :  { %1168 = vsyncpa [#allocation9], 1 }
 0x9ce   :  { %1169 = vsyncpa [#allocation4], 1 }

</bundles_post_ra>
